<compile_context>
chip_gen: v5e
topology: v5e:2x2
jax: 0.10.0
libtpu: 0.0.40
codegen_flags: <defaults>
</compile_context>

<pallas_src>
import jax
import jax.numpy as jnp
from jax.experimental import pallas as pl
from jax.experimental.pallas import tpu as pltpu

LN_EPS = 1e-5  # PyTorch nn.LayerNorm default


def _choose_tiling(B, P):
    """Pick (TB, TP, num_p_tiles): TB images x TP patch rows per grid step."""
    if P >= 128:
        # Long sequences: tile the patch axis; 512 keeps the 256-wide MXU M
        # dimension saturated on v6e/v7x while bounding per-step VMEM.
        for cand in (512, 256, 128):
            if P % cand == 0:
                return 1, cand, P // cand
        return 1, P, 1
    # Small P: fold images into the MXU M dimension (TB * P rows per step).
    # TB is capped so the per-image epilogue stores stay a small static unroll.
    tb = 1
    for cand in range(min(B, 16), 0, -1):
        if B % cand == 0 and cand * P <= 1024 and (cand == B or (cand * P) % 8 == 0):
            tb = cand
            break
    return tb, P, 1


def _make_patch_kernel(TB, TP, num_p_tiles, P, matmul_dtype):
    """Build the per-(batch-block, patch-row-tile) kernel body."""

    def kernel(x_ref, w_ref, b_ref, g1_ref, be1_ref, g2_ref, be2_ref,
               pos_ref, cls_ref, o_ref):
        # x_ref : (TB*TP, E)   patch rows of this step (TB images worth)
        # o_ref : (TB, P+1, E) full token sequences of those images
        p = pl.program_id(1)

        # Token 0 of every image in this block: class_token + pos_embedding[0].
        @pl.when(p == 0)
        def _():
            for bb in range(TB):
                o_ref[bb, 0:1, :] = cls_ref[...].astype(o_ref.dtype)

        x = x_ref[...].astype(jnp.float32)                     # (TB*TP, E)
        inv_e = 1.0 / x.shape[-1]

        # --- LayerNorm 1: independent sum / sum-of-squares XLU reductions ---
        s1 = jnp.sum(x, axis=-1, keepdims=True)
        q1 = jnp.sum(x * x, axis=-1, keepdims=True)
        mu1 = s1 * inv_e
        var1 = q1 * inv_e - mu1 * mu1
        xn = (x - mu1) * jax.lax.rsqrt(var1 + LN_EPS)
        xn = xn * g1_ref[0] + be1_ref[0]

        # --- Linear (E -> E): bf16 operands on the MXU, f32 accumulation ---
        y = jnp.dot(xn.astype(matmul_dtype), w_ref[...],
                    preferred_element_type=jnp.float32) + b_ref[0]

        # --- LayerNorm 2: two-pass form (robust to large post-Linear means) ---
        mu2 = jnp.sum(y, axis=-1, keepdims=True) * inv_e
        d2 = y - mu2
        var2 = jnp.sum(d2 * d2, axis=-1, keepdims=True) * inv_e
        yn = d2 * jax.lax.rsqrt(var2 + LN_EPS)
        yn = yn * g2_ref[0] + be2_ref[0]

        # Positional-embedding slice for this row tile (resident table).
        if num_p_tiles == 1:
            pos_tile = pos_ref[...]                            # (TP, E)
        else:
            pos_tile = pos_ref[pl.ds(p * TP, TP), :]

        if TB == 1:
            out_tile = (yn + pos_tile).astype(o_ref.dtype)
            if num_p_tiles == 1:
                o_ref[0, 1:, :] = out_tile
            else:
                # TODO(synk): the +1 token offset makes this store sublane-
                # misaligned; if vst becomes the binding slot, reserve an
                # 8-row header for the class token and drop the pad on writeback.
                o_ref[0, pl.ds(1 + p * TP, TP), :] = out_tile
        else:
            # Batch-folded path: scatter each image's patch rows to tokens 1..P.
            for bb in range(TB):
                o_ref[bb, 1:, :] = (
                    yn[bb * P:(bb + 1) * P, :] + pos_tile).astype(o_ref.dtype)

    return kernel


def patching_forward(x, params, patch_size, *, matmul_dtype=jnp.bfloat16):
    """ViT patch embedding. x: (B, C, H, W) -> (B, P+1, E) float32."""
    B, C, H, W = x.shape
    ps = patch_size
    h, w = H // ps, W // ps
    P = h * w
    E = ps * ps * C

    # Rearrange 'b c (h p1) (w p2) -> b (h w) (p1 p2 c)', flattened to rows.
    # Left to XLA; allow_input_fusion below lets it fuse into the kernel input.
    patches = x.reshape(B, C, h, ps, w, ps)
    patches = jnp.transpose(patches, (0, 2, 4, 3, 5, 1))       # b h w p1 p2 c
    patches = patches.reshape(B * P, E)

    TB, TP, num_p_tiles = _choose_tiling(B, P)
    m_tile = TB * TP

    w_in = params["w_t"].astype(matmul_dtype)                  # (E, E): x @ W.T
    bias = params["bias"].reshape(1, E).astype(jnp.float32)
    g1 = params["ln1_g"].reshape(1, E).astype(jnp.float32)
    be1 = params["ln1_b"].reshape(1, E).astype(jnp.float32)
    g2 = params["ln2_g"].reshape(1, E).astype(jnp.float32)
    be2 = params["ln2_b"].reshape(1, E).astype(jnp.float32)
    pos = params["pos"].astype(jnp.float32)                    # (P+1, E)
    pos_patches = pos[1:]                                      # (P, E)
    cls_row = (params["cls"].reshape(1, E) + pos[:1]).astype(jnp.float32)

    kernel = _make_patch_kernel(TB, TP, num_p_tiles, P, matmul_dtype)

    # VMEM budget: double-buffered x tile + resident output block,
    # single-buffered constant blocks (weight / pos / small params).
    xb, wb, f32b = x.dtype.itemsize, w_in.dtype.itemsize, 4
    est_vmem = (2 * m_tile * E * xb
                + 2 * TB * (P + 1) * E * f32b
                + E * E * wb
                + P * E * f32b
                + 8 * E * f32b
                + 6 * m_tile * E * f32b)       # compute temporaries headroom
    try:
        phys_vmem = pltpu.get_tpu_info().vmem_capacity_bytes
    except Exception:                          # conservative fallback: v7x size
        phys_vmem = 64 * 2 ** 20
    vmem_limit = int(min((phys_vmem * 7) // 8,
                         max(8 * 2 ** 20, int(est_vmem * 1.25))))

    cost = pl.CostEstimate(
        flops=int(2 * B * P * E * E + 12 * B * P * E),
        transcendentals=int(2 * B * P),
        bytes_accessed=int(B * P * E * xb + B * (P + 1) * E * f32b
                           + E * E * wb + (P + 1) * E * f32b + 7 * E * f32b),
    )

    operands = (patches, w_in, bias, g1, be1, g2, be2, pos_patches, cls_row)

    def build_call(single_buffer_consts):
        const_kw = {}
        if single_buffer_consts:
            # Constant-index blocks are fetched once; a second buffer is pure
            # VMEM waste (8-32 MiB of f32 weight at large E on v7x).
            const_kw = dict(pipeline_mode=pl.Buffered(1))

        def small_spec():
            return pl.BlockSpec((1, E), lambda b, p: (0, 0), **const_kw)

        return pl.pallas_call(
            kernel,
            out_shape=jax.ShapeDtypeStruct((B, P + 1, E), jnp.float32),
            grid_spec=pltpu.PrefetchScalarGridSpec(
                num_scalar_prefetch=0,
                grid=(B // TB, num_p_tiles),
                in_specs=[
                    # Patch rows for this (batch-block, row-tile) step.
                    pl.BlockSpec((m_tile, E),
                                 lambda b, p: (b * num_p_tiles + p, 0)),
                    # Projection weight (transposed), resident.
                    pl.BlockSpec((E, E), lambda b, p: (0, 0), **const_kw),
                    small_spec(),      # bias
                    small_spec(),      # ln1 gamma
                    small_spec(),      # ln1 beta
                    small_spec(),      # ln2 gamma
                    small_spec(),      # ln2 beta
                    # pos[1:] as one resident (P, E) block, sliced in-kernel.
                    pl.BlockSpec((P, E), lambda b, p: (0, 0), **const_kw),
                    small_spec(),      # class_token + pos[0]
                ],
                out_specs=pl.BlockSpec((TB, P + 1, E), lambda b, p: (b, 0, 0)),
            ),
            compiler_params=pltpu.CompilerParams(
                dimension_semantics=("parallel", "arbitrary"),
                vmem_limit_bytes=vmem_limit,
                allow_input_fusion=[True] + [False] * 8,
            ),
            cost_estimate=cost,
        )

    try:
        return jax.block_until_ready(build_call(True)(*operands))
    except Exception:
        # Some JAX builds reject pl.Buffered on pallas_call block specs; fall
        # back to default double buffering (identical results, more VMEM).
        return build_call(False)(*operands)


def _reference_forward(x, params, patch_size):
    """Pure-JAX float32 reference matching the PyTorch module."""
    B, C, H, W = x.shape
    ps = patch_size
    h, w = H // ps, W // ps
    P = h * w
    E = ps * ps * C
    patches = x.reshape(B, C, h, ps, w, ps)
    patches = jnp.transpose(patches, (0, 2, 4, 3, 5, 1)).reshape(B, P, E)

    def ln(v, g, b):
        mu = jnp.mean(v, axis=-1, keepdims=True)
        var = jnp.mean((v - mu) ** 2, axis=-1, keepdims=True)
        return (v - mu) / jnp.sqrt(var + LN_EPS) * g + b

    y = ln(patches, params["ln1_g"], params["ln1_b"])
    y = y @ params["w_t"] + params["bias"]
    y = ln(y, params["ln2_g"], params["ln2_b"])
    cls_tok = jnp.broadcast_to(params["cls"], (B, 1, E))
    out = jnp.concatenate([cls_tok, y], axis=1)
    return out + params["pos"]


if __name__ == "__main__":
    # Small config: in_channels=4, img_size=16, patch_size=8
    #   -> num_patches P = 4, embed_size E = 8*8*4 = 256
    B, C, H, W = 2, 4, 16, 16
    ps = 8
    P = (H // ps) * (W // ps)
    E = ps * ps * C

    key = jax.random.PRNGKey(0)
    kx, kw, kb, kg1, kb1, kg2, kb2, kcls, kpos = jax.random.split(key, 9)

    x = jax.random.normal(kx, (B, C, H, W), dtype=jnp.float32)

    params = {
        # Linear weight stored transposed: forward is x @ w_t + bias.
        "w_t": jax.random.normal(kw, (E, E), dtype=jnp.float32) * 0.02,
        "bias": jax.random.normal(kb, (E,), dtype=jnp.float32) * 0.02,
        # LayerNorm params (non-trivial, to exercise the affine path)
        "ln1_g": 1.0 + 0.1 * jax.random.normal(kg1, (E,), dtype=jnp.float32),
        "ln1_b": 0.1 * jax.random.normal(kb1, (E,), dtype=jnp.float32),
        "ln2_g": 1.0 + 0.1 * jax.random.normal(kg2, (E,), dtype=jnp.float32),
        "ln2_b": 0.1 * jax.random.normal(kb2, (E,), dtype=jnp.float32),
        # class token (1,1,E) and positional embedding (P+1, E) ~ randn
        "cls": jax.random.normal(kcls, (1, 1, E), dtype=jnp.float32),
        "pos": jax.random.normal(kpos, (P + 1, E), dtype=jnp.float32),
    }

    out = patching_forward(x, params, ps)            # bf16 MXU operands
    out = jax.block_until_ready(out)

    ref = _reference_forward(x, params, ps)
    assert out.shape == (B, P + 1, E), out.shape
    max_err = float(jnp.max(jnp.abs(out - ref)))
    # bf16 matmul operands vs. the pure-f32 reference: loosened tolerance.
    assert jnp.allclose(out, ref, atol=3e-2, rtol=3e-2), max_err

    print("KERNEL_OK")
</pallas_src>

<mosaic_0001>
module attributes {stable_mosaic.version = 11 : i64} {
  func.func @kernel(%arg0: i32, %arg1: i32, %arg2: memref<8x256xf32, #tpu.memory_space<vmem>>, %arg3: memref<256x256xbf16, #tpu.memory_space<vmem>>, %arg4: memref<1x256xf32, #tpu.memory_space<vmem>>, %arg5: memref<1x256xf32, #tpu.memory_space<vmem>>, %arg6: memref<1x256xf32, #tpu.memory_space<vmem>>, %arg7: memref<1x256xf32, #tpu.memory_space<vmem>>, %arg8: memref<1x256xf32, #tpu.memory_space<vmem>>, %arg9: memref<4x256xf32, #tpu.memory_space<vmem>>, %arg10: memref<1x256xf32, #tpu.memory_space<vmem>>, %arg11: memref<2x5x256xf32, #tpu.memory_space<vmem>>) attributes {dimension_semantics = [#tpu.dimension_semantics<parallel>, #tpu.dimension_semantics<arbitrary>], iteration_bounds = array<i64: 1, 1>, scalar_prefetch = 0 : i64, scratch_operands = 0 : i64, tpu.core_type = #tpu.core_type<tc>, window_params = [{transform_indices = @transform_0, window_bounds = array<i64: 8, 256>}, {pipeline_mode = #tpu.pipeline_mode<synchronous>, transform_indices = @transform_1, window_bounds = array<i64: 256, 256>}, {pipeline_mode = #tpu.pipeline_mode<synchronous>, transform_indices = @transform_2, window_bounds = array<i64: 1, 256>}, {pipeline_mode = #tpu.pipeline_mode<synchronous>, transform_indices = @transform_3, window_bounds = array<i64: 1, 256>}, {pipeline_mode = #tpu.pipeline_mode<synchronous>, transform_indices = @transform_4, window_bounds = array<i64: 1, 256>}, {pipeline_mode = #tpu.pipeline_mode<synchronous>, transform_indices = @transform_5, window_bounds = array<i64: 1, 256>}, {pipeline_mode = #tpu.pipeline_mode<synchronous>, transform_indices = @transform_6, window_bounds = array<i64: 1, 256>}, {pipeline_mode = #tpu.pipeline_mode<synchronous>, transform_indices = @transform_7, window_bounds = array<i64: 4, 256>}, {pipeline_mode = #tpu.pipeline_mode<synchronous>, transform_indices = @transform_8, window_bounds = array<i64: 1, 256>}, {transform_indices = @transform_9, window_bounds = array<i64: 2, 5, 256>}]} {
    %c0_i32 = arith.constant 0 : i32
    %0 = arith.cmpi eq, %arg1, %c0_i32 : i32
    %1 = arith.extui %0 : i1 to i32
    %c0_i32_0 = arith.constant 0 : i32
    %2 = arith.cmpi ne, %1, %c0_i32_0 : i32
    scf.if %2 {
      %c0_31 = arith.constant 0 : index
      %c0_32 = arith.constant 0 : index
      %77 = vector.load %arg10[%c0_31, %c0_32] : memref<1x256xf32, #tpu.memory_space<vmem>>, vector<1x256xf32>
      %c0_33 = arith.constant 0 : index
      %c0_34 = arith.constant 0 : index
      %c0_35 = arith.constant 0 : index
      %78 = vector.load %arg11[%c0_33, %c0_34, %c0_35] : memref<2x5x256xf32, #tpu.memory_space<vmem>>, vector<1x1x256xf32>
      %79 = vector.shape_cast %78 : vector<1x1x256xf32> to vector<1x256xf32>
      %80 = vector.shape_cast %77 : vector<1x256xf32> to vector<1x1x256xf32>
      tpu.vector_store %arg11[%c0_33, %c0_34, %c0_35], %80 {strides = array<i32>} : memref<2x5x256xf32, #tpu.memory_space<vmem>>, vector<1x1x256xf32>,
      %c0_36 = arith.constant 0 : index
      %c0_37 = arith.constant 0 : index
      %81 = vector.load %arg10[%c0_36, %c0_37] : memref<1x256xf32, #tpu.memory_space<vmem>>, vector<1x256xf32>
      %c1_38 = arith.constant 1 : index
      %c0_39 = arith.constant 0 : index
      %c0_40 = arith.constant 0 : index
      %82 = vector.load %arg11[%c1_38, %c0_39, %c0_40] : memref<2x5x256xf32, #tpu.memory_space<vmem>>, vector<1x1x256xf32>
      %83 = vector.shape_cast %82 : vector<1x1x256xf32> to vector<1x256xf32>
      %84 = vector.shape_cast %81 : vector<1x256xf32> to vector<1x1x256xf32>
      tpu.vector_store %arg11[%c1_38, %c0_39, %c0_40], %84 {strides = array<i32>} : memref<2x5x256xf32, #tpu.memory_space<vmem>>, vector<1x1x256xf32>,
    } else {
    }
    %c0 = arith.constant 0 : index
    %c0_1 = arith.constant 0 : index
    %3 = vector.load %arg2[%c0, %c0_1] : memref<8x256xf32, #tpu.memory_space<vmem>>, vector<8x256xf32>
    %cst = arith.constant dense<0.000000e+00> : vector<8xf32>
    %4 = vector.multi_reduction <add>, %3, %cst [1] : vector<8x256xf32> to vector<8xf32>
    %5 = vector.shape_cast %4 : vector<8xf32> to vector<8x1xf32>
    %6 = arith.mulf %3, %3 : vector<8x256xf32>
    %cst_2 = arith.constant dense<0.000000e+00> : vector<8xf32>
    %7 = vector.multi_reduction <add>, %6, %cst_2 [1] : vector<8x256xf32> to vector<8xf32>
    %8 = vector.shape_cast %7 : vector<8xf32> to vector<8x1xf32>
    %cst_3 = arith.constant 3.906250e-03 : f32
    %9 = vector.broadcast %cst_3 : f32 to vector<8x1xf32>
    %10 = arith.mulf %5, %9 : vector<8x1xf32>
    %cst_4 = arith.constant 3.906250e-03 : f32
    %11 = vector.broadcast %cst_4 : f32 to vector<8x1xf32>
    %12 = arith.mulf %8, %11 : vector<8x1xf32>
    %13 = arith.mulf %10, %10 : vector<8x1xf32>
    %14 = arith.subf %12, %13 : vector<8x1xf32>
    %15 = vector.broadcast %10 : vector<8x1xf32> to vector<8x256xf32>
    %16 = arith.subf %3, %15 : vector<8x256xf32>
    %cst_5 = arith.constant 9.99999974E-6 : f32
    %17 = vector.broadcast %cst_5 : f32 to vector<8x1xf32>
    %18 = arith.addf %14, %17 : vector<8x1xf32>
    %19 = math.rsqrt %18 : vector<8x1xf32>
    %20 = vector.broadcast %19 : vector<8x1xf32> to vector<8x256xf32>
    %21 = arith.mulf %16, %20 : vector<8x256xf32>
    %c0_6 = arith.constant 0 : index
    %c0_7 = arith.constant 0 : index
    %22 = vector.load %arg5[%c0_6, %c0_7] : memref<1x256xf32, #tpu.memory_space<vmem>>, vector<1x256xf32>
    %23 = vector.shape_cast %22 : vector<1x256xf32> to vector<256xf32>
    %24 = vector.shape_cast %23 : vector<256xf32> to vector<1x256xf32>
    %25 = vector.broadcast %24 : vector<1x256xf32> to vector<8x256xf32>
    %26 = arith.mulf %21, %25 : vector<8x256xf32>
    %c0_8 = arith.constant 0 : index
    %c0_9 = arith.constant 0 : index
    %27 = vector.load %arg6[%c0_8, %c0_9] : memref<1x256xf32, #tpu.memory_space<vmem>>, vector<1x256xf32>
    %28 = vector.shape_cast %27 : vector<1x256xf32> to vector<256xf32>
    %29 = vector.shape_cast %28 : vector<256xf32> to vector<1x256xf32>
    %30 = vector.broadcast %29 : vector<1x256xf32> to vector<8x256xf32>
    %31 = arith.addf %26, %30 : vector<8x256xf32>
    %32 = arith.truncf %31 : vector<8x256xf32> to vector<8x256xbf16>
    %c0_10 = arith.constant 0 : index
    %c0_11 = arith.constant 0 : index
    %33 = vector.load %arg3[%c0_10, %c0_11] : memref<256x256xbf16, #tpu.memory_space<vmem>>, vector<256x256xbf16>
    %cst_12 = arith.constant dense<0.000000e+00> : vector<8x256xf32>
    %34 = tpu.matmul %32, %33, %cst_12 {dimension_numbers = #tpu.dot_dimension_numbers<[1], [0], [0], [1], [0, 0, 1, 1], [], []>} : vector<8x256xbf16>, vector<256x256xbf16>, vector<8x256xf32> -> vector<8x256xf32>
    %c0_13 = arith.constant 0 : index
    %c0_14 = arith.constant 0 : index
    %35 = vector.load %arg4[%c0_13, %c0_14] : memref<1x256xf32, #tpu.memory_space<vmem>>, vector<1x256xf32>
    %36 = vector.shape_cast %35 : vector<1x256xf32> to vector<256xf32>
    %37 = vector.shape_cast %36 : vector<256xf32> to vector<1x256xf32>
    %38 = vector.broadcast %37 : vector<1x256xf32> to vector<8x256xf32>
    %39 = arith.addf %34, %38 : vector<8x256xf32>
    %cst_15 = arith.constant dense<0.000000e+00> : vector<8xf32>
    %40 = vector.multi_reduction <add>, %39, %cst_15 [1] : vector<8x256xf32> to vector<8xf32>
    %41 = vector.shape_cast %40 : vector<8xf32> to vector<8x1xf32>
    %cst_16 = arith.constant 3.906250e-03 : f32
    %42 = vector.broadcast %cst_16 : f32 to vector<8x1xf32>
    %43 = arith.mulf %41, %42 : vector<8x1xf32>
    %44 = vector.broadcast %43 : vector<8x1xf32> to vector<8x256xf32>
    %45 = arith.subf %39, %44 : vector<8x256xf32>
    %46 = arith.mulf %45, %45 : vector<8x256xf32>
    %cst_17 = arith.constant dense<0.000000e+00> : vector<8xf32>
    %47 = vector.multi_reduction <add>, %46, %cst_17 [1] : vector<8x256xf32> to vector<8xf32>
    %48 = vector.shape_cast %47 : vector<8xf32> to vector<8x1xf32>
    %cst_18 = arith.constant 3.906250e-03 : f32
    %49 = vector.broadcast %cst_18 : f32 to vector<8x1xf32>
    %50 = arith.mulf %48, %49 : vector<8x1xf32>
    %cst_19 = arith.constant 9.99999974E-6 : f32
    %51 = vector.broadcast %cst_19 : f32 to vector<8x1xf32>
    %52 = arith.addf %50, %51 : vector<8x1xf32>
    %53 = math.rsqrt %52 : vector<8x1xf32>
    %54 = vector.broadcast %53 : vector<8x1xf32> to vector<8x256xf32>
    %55 = arith.mulf %45, %54 : vector<8x256xf32>
    %c0_20 = arith.constant 0 : index
    %c0_21 = arith.constant 0 : index
    %56 = vector.load %arg7[%c0_20, %c0_21] : memref<1x256xf32, #tpu.memory_space<vmem>>, vector<1x256xf32>
    %57 = vector.shape_cast %56 : vector<1x256xf32> to vector<256xf32>
    %58 = vector.shape_cast %57 : vector<256xf32> to vector<1x256xf32>
    %59 = vector.broadcast %58 : vector<1x256xf32> to vector<8x256xf32>
    %60 = arith.mulf %55, %59 : vector<8x256xf32>
    %c0_22 = arith.constant 0 : index
    %c0_23 = arith.constant 0 : index
    %61 = vector.load %arg8[%c0_22, %c0_23] : memref<1x256xf32, #tpu.memory_space<vmem>>, vector<1x256xf32>
    %62 = vector.shape_cast %61 : vector<1x256xf32> to vector<256xf32>
    %63 = vector.shape_cast %62 : vector<256xf32> to vector<1x256xf32>
    %64 = vector.broadcast %63 : vector<1x256xf32> to vector<8x256xf32>
    %65 = arith.addf %60, %64 : vector<8x256xf32>
    %c0_24 = arith.constant 0 : index
    %c0_25 = arith.constant 0 : index
    %66 = vector.load %arg9[%c0_24, %c0_25] : memref<4x256xf32, #tpu.memory_space<vmem>>, vector<4x256xf32>
    %67 = vector.extract_strided_slice %65 {offsets = [0, 0], sizes = [4, 256], strides = [1, 1]} : vector<8x256xf32> to vector<4x256xf32>
    %68 = arith.addf %67, %66 : vector<4x256xf32>
    %c0_26 = arith.constant 0 : index
    %c1 = arith.constant 1 : index
    %c0_27 = arith.constant 0 : index
    %69 = vector.load %arg11[%c0_26, %c1, %c0_27] : memref<2x5x256xf32, #tpu.memory_space<vmem>>, vector<1x4x256xf32>
    %70 = vector.shape_cast %69 : vector<1x4x256xf32> to vector<4x256xf32>
    %71 = vector.shape_cast %68 : vector<4x256xf32> to vector<1x4x256xf32>
    tpu.vector_store %arg11[%c0_26, %c1, %c0_27], %71 {strides = array<i32>} : memref<2x5x256xf32, #tpu.memory_space<vmem>>, vector<1x4x256xf32>,
    %72 = vector.extract_strided_slice %65 {offsets = [4, 0], sizes = [4, 256], strides = [1, 1]} : vector<8x256xf32> to vector<4x256xf32>
    %73 = arith.addf %72, %66 : vector<4x256xf32>
    %c1_28 = arith.constant 1 : index
    %c1_29 = arith.constant 1 : index
    %c0_30 = arith.constant 0 : index
    %74 = vector.load %arg11[%c1_28, %c1_29, %c0_30] : memref<2x5x256xf32, #tpu.memory_space<vmem>>, vector<1x4x256xf32>
    %75 = vector.shape_cast %74 : vector<1x4x256xf32> to vector<4x256xf32>
    %76 = vector.shape_cast %73 : vector<4x256xf32> to vector<1x4x256xf32>
    tpu.vector_store %arg11[%c1_28, %c1_29, %c0_30], %76 {strides = array<i32>} : memref<2x5x256xf32, #tpu.memory_space<vmem>>, vector<1x4x256xf32>,
    return
  }
  func.func @transform_0(%arg0: i32, %arg1: i32) -> (i32, i32) {
    %c1_i32 = arith.constant 1 : i32
    %0 = arith.muli %arg0, %c1_i32 : i32
    %1 = arith.addi %0, %arg1 : i32
    %c0_i32 = arith.constant 0 : i32
    %c0_i32_0 = arith.constant 0 : i32
    return %1, %c0_i32 : i32, i32
  }
  func.func @transform_1(%arg0: i32, %arg1: i32) -> (i32, i32) {
    %c0_i32 = arith.constant 0 : i32
    %c0_i32_0 = arith.constant 0 : i32
    %c0_i32_1 = arith.constant 0 : i32
    return %c0_i32, %c0_i32_0 : i32, i32
  }
  func.func @transform_2(%arg0: i32, %arg1: i32) -> (i32, i32) {
    %c0_i32 = arith.constant 0 : i32
    %c0_i32_0 = arith.constant 0 : i32
    %c0_i32_1 = arith.constant 0 : i32
    return %c0_i32, %c0_i32_0 : i32, i32
  }
  func.func @transform_3(%arg0: i32, %arg1: i32) -> (i32, i32) {
    %c0_i32 = arith.constant 0 : i32
    %c0_i32_0 = arith.constant 0 : i32
    %c0_i32_1 = arith.constant 0 : i32
    return %c0_i32, %c0_i32_0 : i32, i32
  }
  func.func @transform_4(%arg0: i32, %arg1: i32) -> (i32, i32) {
    %c0_i32 = arith.constant 0 : i32
    %c0_i32_0 = arith.constant 0 : i32
    %c0_i32_1 = arith.constant 0 : i32
    return %c0_i32, %c0_i32_0 : i32, i32
  }
  func.func @transform_5(%arg0: i32, %arg1: i32) -> (i32, i32) {
    %c0_i32 = arith.constant 0 : i32
    %c0_i32_0 = arith.constant 0 : i32
    %c0_i32_1 = arith.constant 0 : i32
    return %c0_i32, %c0_i32_0 : i32, i32
  }
  func.func @transform_6(%arg0: i32, %arg1: i32) -> (i32, i32) {
    %c0_i32 = arith.constant 0 : i32
    %c0_i32_0 = arith.constant 0 : i32
    %c0_i32_1 = arith.constant 0 : i32
    return %c0_i32, %c0_i32_0 : i32, i32
  }
  func.func @transform_7(%arg0: i32, %arg1: i32) -> (i32, i32) {
    %c0_i32 = arith.constant 0 : i32
    %c0_i32_0 = arith.constant 0 : i32
    %c0_i32_1 = arith.constant 0 : i32
    return %c0_i32, %c0_i32_0 : i32, i32
  }
  func.func @transform_8(%arg0: i32, %arg1: i32) -> (i32, i32) {
    %c0_i32 = arith.constant 0 : i32
    %c0_i32_0 = arith.constant 0 : i32
    %c0_i32_1 = arith.constant 0 : i32
    return %c0_i32, %c0_i32_0 : i32, i32
  }
  func.func @transform_9(%arg0: i32, %arg1: i32) -> (i32, i32, i32) {
    %c0_i32 = arith.constant 0 : i32
    %c0_i32_0 = arith.constant 0 : i32
    %c0_i32_1 = arith.constant 0 : i32
    return %arg0, %c0_i32, %c0_i32_0 : i32, i32, i32
  }
}

module attributes {stable_mosaic.version = 11 : i64} {
  func.func @kernel(%arg0: i32, %arg1: i32, %arg2: memref<8x256xf32, #tpu.memory_space<vmem>>, %arg3: memref<256x256xbf16, #tpu.memory_space<vmem>>, %arg4: memref<1x256xf32, #tpu.memory_space<vmem>>, %arg5: memref<1x256xf32, #tpu.memory_space<vmem>>, %arg6: memref<1x256xf32, #tpu.memory_space<vmem>>, %arg7: memref<1x256xf32, #tpu.memory_space<vmem>>, %arg8: memref<1x256xf32, #tpu.memory_space<vmem>>, %arg9: memref<4x256xf32, #tpu.memory_space<vmem>>, %arg10: memref<1x256xf32, #tpu.memory_space<vmem>>, %arg11: memref<2x5x256xf32, #tpu.memory_space<vmem>>) attributes {dimension_semantics = [#tpu.dimension_semantics<parallel>, #tpu.dimension_semantics<arbitrary>], iteration_bounds = array<i64: 1, 1>, scalar_prefetch = 0 : i64, scratch_operands = 0 : i64, tpu.core_type = #tpu.core_type<tc>, window_params = [{transform_indices = @transform_0, window_bounds = array<i64: 8, 256>}, {pipeline_mode = #tpu.pipeline_mode<synchronous>, transform_indices = @transform_1, window_bounds = array<i64: 256, 256>}, {pipeline_mode = #tpu.pipeline_mode<synchronous>, transform_indices = @transform_2, window_bounds = array<i64: 1, 256>}, {pipeline_mode = #tpu.pipeline_mode<synchronous>, transform_indices = @transform_3, window_bounds = array<i64: 1, 256>}, {pipeline_mode = #tpu.pipeline_mode<synchronous>, transform_indices = @transform_4, window_bounds = array<i64: 1, 256>}, {pipeline_mode = #tpu.pipeline_mode<synchronous>, transform_indices = @transform_5, window_bounds = array<i64: 1, 256>}, {pipeline_mode = #tpu.pipeline_mode<synchronous>, transform_indices = @transform_6, window_bounds = array<i64: 1, 256>}, {pipeline_mode = #tpu.pipeline_mode<synchronous>, transform_indices = @transform_7, window_bounds = array<i64: 4, 256>}, {pipeline_mode = #tpu.pipeline_mode<synchronous>, transform_indices = @transform_8, window_bounds = array<i64: 1, 256>}, {transform_indices = @transform_9, window_bounds = array<i64: 2, 5, 256>}]} {
    %c0_i32 = arith.constant 0 : i32
    %0 = arith.cmpi eq, %arg1, %c0_i32 : i32
    %1 = arith.extui %0 : i1 to i32
    %c0_i32_0 = arith.constant 0 : i32
    %2 = arith.cmpi ne, %1, %c0_i32_0 : i32
    scf.if %2 {
      %c0_31 = arith.constant 0 : index
      %c0_32 = arith.constant 0 : index
      %77 = vector.load %arg10[%c0_31, %c0_32] : memref<1x256xf32, #tpu.memory_space<vmem>>, vector<1x256xf32>
      %c0_33 = arith.constant 0 : index
      %c0_34 = arith.constant 0 : index
      %c0_35 = arith.constant 0 : index
      %78 = vector.load %arg11[%c0_33, %c0_34, %c0_35] : memref<2x5x256xf32, #tpu.memory_space<vmem>>, vector<1x1x256xf32>
      %79 = vector.shape_cast %78 : vector<1x1x256xf32> to vector<1x256xf32>
      %80 = vector.shape_cast %77 : vector<1x256xf32> to vector<1x1x256xf32>
      tpu.vector_store %arg11[%c0_33, %c0_34, %c0_35], %80 {strides = array<i32>} : memref<2x5x256xf32, #tpu.memory_space<vmem>>, vector<1x1x256xf32>,
      %c0_36 = arith.constant 0 : index
      %c0_37 = arith.constant 0 : index
      %81 = vector.load %arg10[%c0_36, %c0_37] : memref<1x256xf32, #tpu.memory_space<vmem>>, vector<1x256xf32>
      %c1_38 = arith.constant 1 : index
      %c0_39 = arith.constant 0 : index
      %c0_40 = arith.constant 0 : index
      %82 = vector.load %arg11[%c1_38, %c0_39, %c0_40] : memref<2x5x256xf32, #tpu.memory_space<vmem>>, vector<1x1x256xf32>
      %83 = vector.shape_cast %82 : vector<1x1x256xf32> to vector<1x256xf32>
      %84 = vector.shape_cast %81 : vector<1x256xf32> to vector<1x1x256xf32>
      tpu.vector_store %arg11[%c1_38, %c0_39, %c0_40], %84 {strides = array<i32>} : memref<2x5x256xf32, #tpu.memory_space<vmem>>, vector<1x1x256xf32>,
    } else {
    }
    %c0 = arith.constant 0 : index
    %c0_1 = arith.constant 0 : index
    %3 = vector.load %arg2[%c0, %c0_1] : memref<8x256xf32, #tpu.memory_space<vmem>>, vector<8x256xf32>
    %cst = arith.constant dense<0.000000e+00> : vector<8xf32>
    %4 = vector.multi_reduction <add>, %3, %cst [1] : vector<8x256xf32> to vector<8xf32>
    %5 = vector.shape_cast %4 : vector<8xf32> to vector<8x1xf32>
    %6 = arith.mulf %3, %3 : vector<8x256xf32>
    %cst_2 = arith.constant dense<0.000000e+00> : vector<8xf32>
    %7 = vector.multi_reduction <add>, %6, %cst_2 [1] : vector<8x256xf32> to vector<8xf32>
    %8 = vector.shape_cast %7 : vector<8xf32> to vector<8x1xf32>
    %cst_3 = arith.constant 3.906250e-03 : f32
    %9 = vector.broadcast %cst_3 : f32 to vector<8x1xf32>
    %10 = arith.mulf %5, %9 : vector<8x1xf32>
    %cst_4 = arith.constant 3.906250e-03 : f32
    %11 = vector.broadcast %cst_4 : f32 to vector<8x1xf32>
    %12 = arith.mulf %8, %11 : vector<8x1xf32>
    %13 = arith.mulf %10, %10 : vector<8x1xf32>
    %14 = arith.subf %12, %13 : vector<8x1xf32>
    %15 = vector.broadcast %10 : vector<8x1xf32> to vector<8x256xf32>
    %16 = arith.subf %3, %15 : vector<8x256xf32>
    %cst_5 = arith.constant 9.99999974E-6 : f32
    %17 = vector.broadcast %cst_5 : f32 to vector<8x1xf32>
    %18 = arith.addf %14, %17 : vector<8x1xf32>
    %19 = math.rsqrt %18 : vector<8x1xf32>
    %20 = vector.broadcast %19 : vector<8x1xf32> to vector<8x256xf32>
    %21 = arith.mulf %16, %20 : vector<8x256xf32>
    %c0_6 = arith.constant 0 : index
    %c0_7 = arith.constant 0 : index
    %22 = vector.load %arg5[%c0_6, %c0_7] : memref<1x256xf32, #tpu.memory_space<vmem>>, vector<1x256xf32>
    %23 = vector.shape_cast %22 : vector<1x256xf32> to vector<256xf32>
    %24 = vector.shape_cast %23 : vector<256xf32> to vector<1x256xf32>
    %25 = vector.broadcast %24 : vector<1x256xf32> to vector<8x256xf32>
    %26 = arith.mulf %21, %25 : vector<8x256xf32>
    %c0_8 = arith.constant 0 : index
    %c0_9 = arith.constant 0 : index
    %27 = vector.load %arg6[%c0_8, %c0_9] : memref<1x256xf32, #tpu.memory_space<vmem>>, vector<1x256xf32>
    %28 = vector.shape_cast %27 : vector<1x256xf32> to vector<256xf32>
    %29 = vector.shape_cast %28 : vector<256xf32> to vector<1x256xf32>
    %30 = vector.broadcast %29 : vector<1x256xf32> to vector<8x256xf32>
    %31 = arith.addf %26, %30 : vector<8x256xf32>
    %32 = arith.truncf %31 : vector<8x256xf32> to vector<8x256xbf16>
    %c0_10 = arith.constant 0 : index
    %c0_11 = arith.constant 0 : index
    %33 = vector.load %arg3[%c0_10, %c0_11] : memref<256x256xbf16, #tpu.memory_space<vmem>>, vector<256x256xbf16>
    %cst_12 = arith.constant dense<0.000000e+00> : vector<8x256xf32>
    %34 = tpu.matmul %32, %33, %cst_12 {dimension_numbers = #tpu.dot_dimension_numbers<[1], [0], [0], [1], [0, 0, 1, 1], [], []>} : vector<8x256xbf16>, vector<256x256xbf16>, vector<8x256xf32> -> vector<8x256xf32>
    %c0_13 = arith.constant 0 : index
    %c0_14 = arith.constant 0 : index
    %35 = vector.load %arg4[%c0_13, %c0_14] : memref<1x256xf32, #tpu.memory_space<vmem>>, vector<1x256xf32>
    %36 = vector.shape_cast %35 : vector<1x256xf32> to vector<256xf32>
    %37 = vector.shape_cast %36 : vector<256xf32> to vector<1x256xf32>
    %38 = vector.broadcast %37 : vector<1x256xf32> to vector<8x256xf32>
    %39 = arith.addf %34, %38 : vector<8x256xf32>
    %cst_15 = arith.constant dense<0.000000e+00> : vector<8xf32>
    %40 = vector.multi_reduction <add>, %39, %cst_15 [1] : vector<8x256xf32> to vector<8xf32>
    %41 = vector.shape_cast %40 : vector<8xf32> to vector<8x1xf32>
    %cst_16 = arith.constant 3.906250e-03 : f32
    %42 = vector.broadcast %cst_16 : f32 to vector<8x1xf32>
    %43 = arith.mulf %41, %42 : vector<8x1xf32>
    %44 = vector.broadcast %43 : vector<8x1xf32> to vector<8x256xf32>
    %45 = arith.subf %39, %44 : vector<8x256xf32>
    %46 = arith.mulf %45, %45 : vector<8x256xf32>
    %cst_17 = arith.constant dense<0.000000e+00> : vector<8xf32>
    %47 = vector.multi_reduction <add>, %46, %cst_17 [1] : vector<8x256xf32> to vector<8xf32>
    %48 = vector.shape_cast %47 : vector<8xf32> to vector<8x1xf32>
    %cst_18 = arith.constant 3.906250e-03 : f32
    %49 = vector.broadcast %cst_18 : f32 to vector<8x1xf32>
    %50 = arith.mulf %48, %49 : vector<8x1xf32>
    %cst_19 = arith.constant 9.99999974E-6 : f32
    %51 = vector.broadcast %cst_19 : f32 to vector<8x1xf32>
    %52 = arith.addf %50, %51 : vector<8x1xf32>
    %53 = math.rsqrt %52 : vector<8x1xf32>
    %54 = vector.broadcast %53 : vector<8x1xf32> to vector<8x256xf32>
    %55 = arith.mulf %45, %54 : vector<8x256xf32>
    %c0_20 = arith.constant 0 : index
    %c0_21 = arith.constant 0 : index
    %56 = vector.load %arg7[%c0_20, %c0_21] : memref<1x256xf32, #tpu.memory_space<vmem>>, vector<1x256xf32>
    %57 = vector.shape_cast %56 : vector<1x256xf32> to vector<256xf32>
    %58 = vector.shape_cast %57 : vector<256xf32> to vector<1x256xf32>
    %59 = vector.broadcast %58 : vector<1x256xf32> to vector<8x256xf32>
    %60 = arith.mulf %55, %59 : vector<8x256xf32>
    %c0_22 = arith.constant 0 : index
    %c0_23 = arith.constant 0 : index
    %61 = vector.load %arg8[%c0_22, %c0_23] : memref<1x256xf32, #tpu.memory_space<vmem>>, vector<1x256xf32>
    %62 = vector.shape_cast %61 : vector<1x256xf32> to vector<256xf32>
    %63 = vector.shape_cast %62 : vector<256xf32> to vector<1x256xf32>
    %64 = vector.broadcast %63 : vector<1x256xf32> to vector<8x256xf32>
    %65 = arith.addf %60, %64 : vector<8x256xf32>
    %c0_24 = arith.constant 0 : index
    %c0_25 = arith.constant 0 : index
    %66 = vector.load %arg9[%c0_24, %c0_25] : memref<4x256xf32, #tpu.memory_space<vmem>>, vector<4x256xf32>
    %67 = vector.extract_strided_slice %65 {offsets = [0, 0], sizes = [4, 256], strides = [1, 1]} : vector<8x256xf32> to vector<4x256xf32>
    %68 = arith.addf %67, %66 : vector<4x256xf32>
    %c0_26 = arith.constant 0 : index
    %c1 = arith.constant 1 : index
    %c0_27 = arith.constant 0 : index
    %69 = vector.load %arg11[%c0_26, %c1, %c0_27] : memref<2x5x256xf32, #tpu.memory_space<vmem>>, vector<1x4x256xf32>
    %70 = vector.shape_cast %69 : vector<1x4x256xf32> to vector<4x256xf32>
    %71 = vector.shape_cast %68 : vector<4x256xf32> to vector<1x4x256xf32>
    tpu.vector_store %arg11[%c0_26, %c1, %c0_27], %71 {strides = array<i32>} : memref<2x5x256xf32, #tpu.memory_space<vmem>>, vector<1x4x256xf32>,
    %72 = vector.extract_strided_slice %65 {offsets = [4, 0], sizes = [4, 256], strides = [1, 1]} : vector<8x256xf32> to vector<4x256xf32>
    %73 = arith.addf %72, %66 : vector<4x256xf32>
    %c1_28 = arith.constant 1 : index
    %c1_29 = arith.constant 1 : index
    %c0_30 = arith.constant 0 : index
    %74 = vector.load %arg11[%c1_28, %c1_29, %c0_30] : memref<2x5x256xf32, #tpu.memory_space<vmem>>, vector<1x4x256xf32>
    %75 = vector.shape_cast %74 : vector<1x4x256xf32> to vector<4x256xf32>
    %76 = vector.shape_cast %73 : vector<4x256xf32> to vector<1x4x256xf32>
    tpu.vector_store %arg11[%c1_28, %c1_29, %c0_30], %76 {strides = array<i32>} : memref<2x5x256xf32, #tpu.memory_space<vmem>>, vector<1x4x256xf32>,
    return
  }
  func.func @transform_0(%arg0: i32, %arg1: i32) -> (i32, i32) {
    %c1_i32 = arith.constant 1 : i32
    %0 = arith.muli %arg0, %c1_i32 : i32
    %1 = arith.addi %0, %arg1 : i32
    %c0_i32 = arith.constant 0 : i32
    %c0_i32_0 = arith.constant 0 : i32
    return %1, %c0_i32 : i32, i32
  }
  func.func @transform_1(%arg0: i32, %arg1: i32) -> (i32, i32) {
    %c0_i32 = arith.constant 0 : i32
    %c0_i32_0 = arith.constant 0 : i32
    %c0_i32_1 = arith.constant 0 : i32
    return %c0_i32, %c0_i32_0 : i32, i32
  }
  func.func @transform_2(%arg0: i32, %arg1: i32) -> (i32, i32) {
    %c0_i32 = arith.constant 0 : i32
    %c0_i32_0 = arith.constant 0 : i32
    %c0_i32_1 = arith.constant 0 : i32
    return %c0_i32, %c0_i32_0 : i32, i32
  }
  func.func @transform_3(%arg0: i32, %arg1: i32) -> (i32, i32) {
    %c0_i32 = arith.constant 0 : i32
    %c0_i32_0 = arith.constant 0 : i32
    %c0_i32_1 = arith.constant 0 : i32
    return %c0_i32, %c0_i32_0 : i32, i32
  }
  func.func @transform_4(%arg0: i32, %arg1: i32) -> (i32, i32) {
    %c0_i32 = arith.constant 0 : i32
    %c0_i32_0 = arith.constant 0 : i32
    %c0_i32_1 = arith.constant 0 : i32
    return %c0_i32, %c0_i32_0 : i32, i32
  }
  func.func @transform_5(%arg0: i32, %arg1: i32) -> (i32, i32) {
    %c0_i32 = arith.constant 0 : i32
    %c0_i32_0 = arith.constant 0 : i32
    %c0_i32_1 = arith.constant 0 : i32
    return %c0_i32, %c0_i32_0 : i32, i32
  }
  func.func @transform_6(%arg0: i32, %arg1: i32) -> (i32, i32) {
    %c0_i32 = arith.constant 0 : i32
    %c0_i32_0 = arith.constant 0 : i32
    %c0_i32_1 = arith.constant 0 : i32
    return %c0_i32, %c0_i32_0 : i32, i32
  }
  func.func @transform_7(%arg0: i32, %arg1: i32) -> (i32, i32) {
    %c0_i32 = arith.constant 0 : i32
    %c0_i32_0 = arith.constant 0 : i32
    %c0_i32_1 = arith.constant 0 : i32
    return %c0_i32, %c0_i32_0 : i32, i32
  }
  func.func @transform_8(%arg0: i32, %arg1: i32) -> (i32, i32) {
    %c0_i32 = arith.constant 0 : i32
    %c0_i32_0 = arith.constant 0 : i32
    %c0_i32_1 = arith.constant 0 : i32
    return %c0_i32, %c0_i32_0 : i32, i32
  }
  func.func @transform_9(%arg0: i32, %arg1: i32) -> (i32, i32, i32) {
    %c0_i32 = arith.constant 0 : i32
    %c0_i32_0 = arith.constant 0 : i32
    %c0_i32_1 = arith.constant 0 : i32
    return %arg0, %c0_i32, %c0_i32_0 : i32, i32, i32
  }
}

</mosaic_0001>

<bundles_post_ra>
// kernel: tpu_custom_call.1
= control target key start
LH: loop header
LB: loop body
LE: loop exit
PB: predicated region body
PF: predicated region fallthrough
CT: control target
= control target key end

     0   :  { %14 = vsyncpa [#allocation3], 0  ;;  %s961_s0 = inlined_call_operand.hbm [shape: f32[8,256], index: 0, kind: input, shape index: {}]   ;;  %s962_s1 = inlined_call_operand.hbm [shape: bf16[256,256], index: 1, kind: input, shape index: {}]   ;;  %s963_s2 = inlined_call_operand.hbm [shape: f32[1,256], index: 2, kind: input, shape index: {}]   ;;  %s964_s3 = inlined_call_operand.vmem [shape: f32[1,256], index: 3, kind: input, shape index: {}]   ;;  %s965_s4 = inlined_call_operand.hbm [shape: f32[1,256], index: 4, kind: input, shape index: {}]   ;;  %s966_s5 = inlined_call_operand.vmem [shape: f32[1,256], index: 5, kind: input, shape index: {}]   ;;  %s967_s6 = inlined_call_operand.hbm [shape: f32[1,256], index: 6, kind: input, shape index: {}]   ;;  %s968_s7 = inlined_call_operand.hbm [shape: f32[4,256], index: 7, kind: input, shape index: {}]   ;;  %s969_s8 = inlined_call_operand.vmem [shape: f32[1,256], index: 8, kind: input, shape index: {}]   ;;  %s970_s9 = inlined_call_operand.vmem [shape: f32[2,5,256], index: 9, kind: output, shape index: {}]  }
   0x1   :  { %15 = vsyncpa [#allocation5], 0 }
   0x2   :  { %16 = vsyncpa [#allocation8], 0  ;;  %s37_s11 = sshll.u32 %s962_s1, 4  ;;  %s38_s11 = int_to_ptr.hbm [resolvable:$true] %s37_s11 }
   0x3   :  { %17 = vsyncpa [#allocation11], 0  ;;  %s843_s12 = smov [#allocation4]   ;;  %s64_s16 = sshll.u32 %s965_s4, 4  ;;  %s65_s16 = int_to_ptr.hbm [resolvable:$true] %s64_s16 }
   0x4   :  { %s39_s13 = sshll.u32 %s843_s12, 4  ;;  %s844_s17 = smov 128   ;;  %s40_s13 = int_to_ptr.vmem [resolvable:$true] %s39_s13 }
   0x5   :  { %s845_s18 = smov 8   ;;  %s846_s19 = smov [#allocation7]  }
   0x6   :  { %45 = dma.hbm_to_vmem [thread:$0]  %s38_s11, 4096, %s40_s13, [#allocation5], %s844_s17, %s844_s17, %s845_s18  }
   0x7   :  { %s66_s20 = sshll.u32 %s846_s19, 4  ;;  %s27_s23 = sshll.u32 %s961_s0, 4  ;;  %s67_s20 = int_to_ptr.vmem [resolvable:$true] %s66_s20  ;;  %s28_s23 = int_to_ptr.hbm [resolvable:$true] %s27_s23 }
   0x8   :  { %69 = dma.hbm_to_vmem [thread:$0]  %s65_s16, 32, %s67_s20, [#allocation8]  }
   0x9   :  { %s51_s25 = sshll.u32 %s963_s2, 4  ;;  %s847_s26 = smov [#allocation2]   ;;  %s52_s25 = int_to_ptr.hbm [resolvable:$true] %s51_s25 }
   0xa   :  { %s29_s27 = sshll.u32 %s847_s26, 4  ;;  %s848_s4 = smov [#allocation6]   ;;  %s30_s27 = int_to_ptr.vmem [resolvable:$true] %s29_s27 }
   0xb   :  { %32 = dma.hbm_to_vmem [thread:$0]  %s28_s23, 256, %s30_s27, [#allocation3]  }
   0xc   :  { %s53_s28 = sshll.u32 %s848_s4, 4  ;;  %s77_s10 = sshll.u32 %s967_s6, 4  ;;  %s54_s28 = int_to_ptr.vmem [resolvable:$true] %s53_s28  ;;  %s78_s10 = int_to_ptr.hbm [resolvable:$true] %s77_s10 }
   0xd   :  { %56 = dma.hbm_to_vmem [thread:$0]  %s52_s25, 32, %s54_s28, [#allocation5]  }
   0xe   :  { %s88_s12 = sshll.u32 %s968_s7, 4  ;;  %s849_s13 = smov [#allocation9]   ;;  %s89_s12 = int_to_ptr.hbm [resolvable:$true] %s88_s12 }
   0xf   :  { %s79_s2 = sshll.u32 %s849_s13, 4  ;;  %s850_s14 = smov [#allocation10]   ;;  %s80_s2 = int_to_ptr.vmem [resolvable:$true] %s79_s2 }
  0x10   :  { %82 = dma.hbm_to_vmem [thread:$0]  %s78_s10, 32, %s80_s2, [#allocation8]  }
  0x11   :  { %s90_s15 = sshll.u32 %s850_s14, 4  ;;  %s91_s15 = int_to_ptr.vmem [resolvable:$true] %s90_s15 }
  0x12   :  { %93 = dma.hbm_to_vmem [thread:$0]  %s89_s12, 128, %s91_s15, [#allocation11]  }
  0x13   :  { %835 = dma.done.wait [#allocation3], 256  }
  0x14   :  { %836 = vsyncadd [#allocation3], 4294967040 }
  0x15   :  { %837 = dma.done.wait [#allocation5], 4128  }
  0x16   :  { %838 = vsyncadd [#allocation5], 4294963168 }
  0x17   :  { %839 = dma.done.wait [#allocation8], 64  }
  0x18   :  { %840 = vsyncadd [#allocation8], 4294967232 }
  0x19   :  { %841 = dma.done.wait [#allocation11], 128  }
  0x1a   :  { %842 = vsyncadd [#allocation11], 4294967168  ;;  %v126_v0 = vlaneseq  ;;  %v125_v1 = vld [vmem:[%s969_s8] sm:$0x3]  ;;  %v925_v3 = vld [vmem:[#allocation2] sm:$0xff] }
  0x1b   :  { %v132_v2 = vld [vmem:[%s969_s8] sm:$0x3]  ;;  %v930_v4 = vld [vmem:[#allocation2 + $0x8] sm:$0xff]  ;;  %v141_v6 = vmul.f32 %v925_v3, %v925_v3  ;;  %v575_v9 = vld [vmem:[#allocation4 + $0x70] sm:$0xf] }
  0x1c   :  { %vm128_vm0 = vcmp.lt.s32.totalorder %v126_v0, 256  ;;  %v138_v5 = vadd.f32 %v930_v4, %v925_v3  ;;  %v142_v7 = vmul.f32 %v930_v4, %v930_v4  ;;  %v662_v10 = vld [vmem:[#allocation4 + $0x74] sm:$0xf0]  ;;  %v639_v11 = vld [vmem:[#allocation4 + $0xf0] sm:$0xf] }
  0x1d   :  { %130 = vst.msk [vmem:[%s970_s9] ss:$8 sm:$0x3] %vm128_vm0, %v125_v1  ;;  %v576_v12 = vor.u32 %v662_v10, %v575_v9  ;;  %v678_v13 = vld [vmem:[#allocation4 + $0xf4] sm:$0xf0] }
  0x1e   :  { %516 = vst.msk [vmem:[%s970_s9 + $0x10] ss:$8 sm:$0x3] %vm128_vm0, %v132_v2  ;;  %139 = vadd.xlane.f32.xlu0 %v138_v5  ;;  %v143_v8 = vadd.f32 %v142_v7, %v141_v6  ;;  %v661_v14 = vld [vmem:[#allocation4 + $0x74] sm:$0xf]  ;;  %v640_v16 = vor.u32 %v678_v13, %v639_v11 }
  0x1f   :  { %v577_v15 = vld [vmem:[#allocation4 + $0x78] sm:$0xf0]  ;;  %v677_v18 = vld [vmem:[#allocation4 + $0xf4] sm:$0xf]  ;;  %381 = vmatpush.bf16.msra.mxu0 %v576_v12  ;;  %v567_v21 = vld [vmem:[#allocation4 + $0x60] sm:$0xf] }
  0x20   :  { %v580_v17 = vor.u32 %v661_v14, %v577_v15  ;;  %v641_v19 = vld [vmem:[#allocation4 + $0xf8] sm:$0xf0]  ;;  %394 = vmatpush.bf16.msra.mxu1 %v640_v16  ;;  %v660_v22 = vld [vmem:[#allocation4 + $0x64] sm:$0xf0]  ;;  %v631_v23 = vld [vmem:[#allocation4 + $0xe0] sm:$0xf] }
  0x21   :  { %v644_v20 = vor.u32 %v677_v18, %v641_v19  ;;  %v568_v24 = vor.u32 %v660_v22, %v567_v21  ;;  %v676_v25 = vld [vmem:[#allocation4 + $0xe4] sm:$0xf0]  ;;  %v659_v26 = vld [vmem:[#allocation4 + $0x64] sm:$0xf]  ;;  %v569_v27 = vld [vmem:[#allocation4 + $0x68] sm:$0xf0] }
  0x22   :  { %407 = vmatpush.bf16.msra.mxu2 %v580_v17  ;;  %v632_v28 = vor.u32 %v676_v25, %v631_v23  ;;  %v572_v29 = vor.u32 %v659_v26, %v569_v27  ;;  %v675_v30 = vld [vmem:[#allocation4 + $0xe4] sm:$0xf]  ;;  %v633_v31 = vld [vmem:[#allocation4 + $0xe8] sm:$0xf0]  ;;  %v559_v33 = vld [vmem:[#allocation4 + $0x50] sm:$0xf] }
  0x23   :  { %420 = vmatpush.bf16.msra.mxu3 %v644_v20  ;;  %382 = vmatpush.bf16.msra.mxu0 %v568_v24  ;;  %v636_v32 = vor.u32 %v675_v30, %v633_v31  ;;  %v658_v34 = vld [vmem:[#allocation4 + $0x54] sm:$0xf0]  ;;  %v623_v35 = vld [vmem:[#allocation4 + $0xd0] sm:$0xf]  ;;  %v657_v38 = vld [vmem:[#allocation4 + $0x54] sm:$0xf] }
  0x24   :  { %395 = vmatpush.bf16.msra.mxu1 %v632_v28  ;;  %v560_v36 = vor.u32 %v658_v34, %v559_v33  ;;  %v674_v37 = vld [vmem:[#allocation4 + $0xd4] sm:$0xf0]  ;;  %v561_v39 = vld [vmem:[#allocation4 + $0x58] sm:$0xf0]  ;;  %v673_v42 = vld [vmem:[#allocation4 + $0xd4] sm:$0xf] }
  0x25   :  { %v624_v40 = vor.u32 %v674_v37, %v623_v35  ;;  %v564_v41 = vor.u32 %v657_v38, %v561_v39  ;;  %v625_v43 = vld [vmem:[#allocation4 + $0xd8] sm:$0xf0]  ;;  %v551_v45 = vld [vmem:[#allocation4 + $0x40] sm:$0xf]  ;;  %v656_v46 = vld [vmem:[#allocation4 + $0x44] sm:$0xf0] }
  0x26   :  { %144 = vadd.xlane.f32.xlu0 %v143_v8  ;;  %408 = vmatpush.bf16.msra.mxu2 %v572_v29  ;;  %v628_v44 = vor.u32 %v673_v42, %v625_v43  ;;  %v615_v47 = vld [vmem:[#allocation4 + $0xc0] sm:$0xf]  ;;  %v552_v48 = vor.u32 %v656_v46, %v551_v45  ;;  %v672_v49 = vld [vmem:[#allocation4 + $0xc4] sm:$0xf0]  ;;  %v655_v50 = vld [vmem:[#allocation4 + $0x44] sm:$0xf] }
  0x27   :  { %421 = vmatpush.bf16.msra.mxu3 %v636_v32  ;;  %383 = vmatpush.bf16.msra.mxu0 %v560_v36  ;;  %v553_v51 = vld [vmem:[#allocation4 + $0x48] sm:$0xf0]  ;;  %v616_v52 = vor.u32 %v672_v49, %v615_v47  ;;  %v671_v54 = vld [vmem:[#allocation4 + $0xc4] sm:$0xf]  ;;  %v543_v57 = vld [vmem:[#allocation4 + $0x30] sm:$0xf] }
  0x28   :  { %396 = vmatpush.bf16.msra.mxu1 %v624_v40  ;;  %v556_v53 = vor.u32 %v655_v50, %v553_v51  ;;  %v617_v55 = vld [vmem:[#allocation4 + $0xc8] sm:$0xf0]  ;;  %v654_v58 = vld [vmem:[#allocation4 + $0x34] sm:$0xf0]  ;;  %v607_v59 = vld [vmem:[#allocation4 + $0xb0] sm:$0xf] }
  0x29   :  { %v620_v56 = vor.u32 %v671_v54, %v617_v55  ;;  %v544_v60 = vor.u32 %v654_v58, %v543_v57  ;;  %v670_v61 = vld [vmem:[#allocation4 + $0xb4] sm:$0xf0]  ;;  %v653_v62 = vld [vmem:[#allocation4 + $0x34] sm:$0xf]  ;;  %v545_v63 = vld [vmem:[#allocation4 + $0x38] sm:$0xf0] }
  0x2a   :  { %409 = vmatpush.bf16.msra.mxu2 %v564_v41  ;;  %v608_v0 = vor.u32 %v670_v61, %v607_v59  ;;  %v548_v1 = vor.u32 %v653_v62, %v545_v63  ;;  %v669_v2 = vld [vmem:[#allocation4 + $0xb4] sm:$0xf]  ;;  %v609_v5 = vld [vmem:[#allocation4 + $0xb8] sm:$0xf0]  ;;  %v535_v7 = vld [vmem:[#allocation4 + $0x20] sm:$0xf] }
  0x2b   :  { %422 = vmatpush.bf16.msra.mxu3 %v628_v44  ;;  %384 = vmatpush.bf16.msra.mxu0 %v552_v48  ;;  %v612_v6 = vor.u32 %v669_v2, %v609_v5  ;;  %v652_v8 = vld [vmem:[#allocation4 + $0x24] sm:$0xf0]  ;;  %v599_v9 = vld [vmem:[#allocation4 + $0xa0] sm:$0xf]  ;;  %v651_v12 = vld [vmem:[#allocation4 + $0x24] sm:$0xf] }
  0x2c   :  { %397 = vmatpush.bf16.msra.mxu1 %v616_v52  ;;  %v536_v10 = vor.u32 %v652_v8, %v535_v7  ;;  %v668_v11 = vld [vmem:[#allocation4 + $0xa4] sm:$0xf0]  ;;  %v537_v13 = vld [vmem:[#allocation4 + $0x28] sm:$0xf0]  ;;  %v667_v16 = vld [vmem:[#allocation4 + $0xa4] sm:$0xf] }
  0x2d   :  { %v600_v14 = vor.u32 %v668_v11, %v599_v9  ;;  %v540_v15 = vor.u32 %v651_v12, %v537_v13  ;;  %v601_v17 = vld [vmem:[#allocation4 + $0xa8] sm:$0xf0]  ;;  %v527_v18 = vld [vmem:[#allocation4 + $0x10] sm:$0xf]  ;;  %v650_v20 = vld [vmem:[#allocation4 + $0x14] sm:$0xf0] }
  0x2e   :  { %410 = vmatpush.bf16.msra.mxu2 %v556_v53  ;;  %v604_v19 = vor.u32 %v667_v16, %v601_v17  ;;  %v591_v21 = vld [vmem:[#allocation4 + $0x90] sm:$0xf]  ;;  %v666_v22 = vld [vmem:[#allocation4 + $0x94] sm:$0xf0]  ;;  %v528_v23 = vor.u32 %v650_v20, %v527_v18  ;;  %v649_v25 = vld [vmem:[#allocation4 + $0x14] sm:$0xf] }
  0x2f   :  { %423 = vmatpush.bf16.msra.mxu3 %v620_v56  ;;  %385 = vmatpush.bf16.msra.mxu0 %v544_v60  ;;  %v592_v24 = vor.u32 %v666_v22, %v591_v21  ;;  %v529_v26 = vld [vmem:[#allocation4 + $0x18] sm:$0xf0]  ;;  %v665_v27 = vld [vmem:[#allocation4 + $0x94] sm:$0xf]  ;;  %v519_v31 = vld [vmem:[#allocation4] sm:$0xf] }
  0x30   :  { %398 = vmatpush.bf16.msra.mxu1 %v608_v0  ;;  %v532_v29 = vor.u32 %v649_v25, %v529_v26  ;;  %v593_v30 = vld [vmem:[#allocation4 + $0x98] sm:$0xf0]  ;;  %v648_v32 = vld [vmem:[#allocation4 + $0x4] sm:$0xf0]  ;;  %v583_v34 = vld [vmem:[#allocation4 + $0x80] sm:$0xf] }
  0x31   :  { %v596_v33 = vor.u32 %v665_v27, %v593_v30  ;;  %v664_v35 = vld [vmem:[#allocation4 + $0x84] sm:$0xf0]  ;;  %v520_v36 = vor.u32 %v648_v32, %v519_v31  ;;  %v647_v37 = vld [vmem:[#allocation4 + $0x4] sm:$0xf]  ;;  %v521_v38 = vld [vmem:[#allocation4 + $0x8] sm:$0xf0] }
  0x32   :  { %411 = vmatpush.bf16.msra.mxu2 %v548_v1  ;;  %v663_v39 = vld [vmem:[#allocation4 + $0x84] sm:$0xf]  ;;  %v584_v40 = vor.u32 %v664_v35, %v583_v34  ;;  %v585_v41 = vld [vmem:[#allocation4 + $0x88] sm:$0xf0]  ;;  %v524_v42 = vor.u32 %v647_v37, %v521_v38  ;;  %v165_v55 = vld [vmem:[%s964_s3] sm:$0x3] }
  0x33   :  { %424 = vmatpush.bf16.msra.mxu3 %v612_v6  ;;  %386 = vmatpush.bf16.msra.mxu0 %v536_v10  ;;  %v588_v43 = vor.u32 %v663_v39, %v585_v41  ;;  %v173_v57 = vld [vmem:[#allocation7] sm:$0x3]  ;;  %v167_v60 = vperm.slane %v165_v55, 0  ;;  %v168_v61 = vperm.slane %v165_v55, 1  ;;  %v474_v25 = vld [vmem:[#allocation10] sm:$0xff] }
  0x34   :  { %399 = vmatpush.bf16.msra.mxu1 %v600_v14  ;;  %v175_v0 = vperm.slane %v173_v57, 0  ;;  %v176_v2 = vperm.slane %v173_v57, 1  ;;  %476 = vst [vmem:[#allocation1] ss:$2 sm:$0xff] %v474_v25 }
  0x36   :  { %412 = vmatpush.bf16.msra.mxu2 %v540_v15 }
  0x37   :  { %425 = vmatpush.bf16.msra.mxu3 %v604_v19  ;;  %387 = vmatpush.bf16.msra.mxu0 %v528_v23 }
  0x38   :  { %400 = vmatpush.bf16.msra.mxu1 %v592_v24 }
  0x3a   :  { %413 = vmatpush.bf16.msra.mxu2 %v532_v29 }
  0x3b   :  { %426 = vmatpush.bf16.msra.mxu3 %v596_v33  ;;  %388 = vmatpush.bf16.msra.mxu0 %v520_v36  ;;  %v477_v26 = vld.sshfl [vmem:[#allocation1] sm:$0xff pattern:$0x75316420]  ;;  %v478_v27 = vld.sshfl [vmem:[#allocation1 + $0x8] sm:$0xff pattern:$0x75316420] }
  0x3c   :  { %401 = vmatpush.bf16.msra.mxu1 %v584_v40  ;;  %492 = vst [vmem:[#allocation1 + $0x1] ss:$2 sm:$0xff] %v474_v25 }
  0x3e   :  { %414 = vmatpush.bf16.msra.mxu2 %v524_v42  ;;  %v458_v42 = vld [vmem:[%s966_s5] sm:$0x3] }
  0x3f   :  { %427 = vmatpush.bf16.msra.mxu3 %v588_v43 }
  0x43   :  { %v493_v55 = vld.sshfl [vmem:[#allocation1] sm:$0xff pattern:$0x75316420] }
  0x91   :  { %v140_v28 = vpop.xlane.xlu0 %139 }
  0x92   :  { %v146_v44 = vmul.f32 0.00390625, %v140_v28 }
  0x94   :  { %v148_v46 = vmul.f32 %v146_v44, %v146_v44  ;;  %v150_v58 = vsub.f32 %v925_v3, %v146_v44  ;;  %v151_v59 = vsub.f32 %v930_v4, %v146_v44  ;;  %v215_v3 = vld [vmem:[#allocation6] sm:$0x3]  ;;  %v466_v44 = vld [vmem:[#allocation9] sm:$0x3] }
  0x95   :  { %v217_v12 = vperm.slane %v215_v3, 0  ;;  %v218_v13 = vperm.slane %v215_v3, 1 }
  0x99   :  { %v145_v45 = vpop.xlane.xlu0 %144 }
  0x9a   :  { %v147_v47 = vmul.f32 0.00390625, %v145_v45 }
  0x9c   :  { %v149_v48 = vsub.f32 %v147_v47, %v148_v46  ;;  %v460_v46 = vperm.slane %v458_v42, 0  ;;  %v461_v47 = vperm.slane %v458_v42, 1 }
  0x9e   :  { %v152_v49 = vadd.f32 1e-05, %v149_v48 }
  0xa0   :  { %687 = vrsqrt.f32 %v152_v49  ;;  %vm159_vm2 = vweird.f32 %v152_v49 }
  0xa6   :  { %v688_v50 = vpop.eup %687 }
  0xa7   :  { %v154_v51 = vmul.f32 %v688_v50, %v152_v49  ;;  %vm160_vm1 = vweird.f32 %v688_v50  ;;  %v468_v49 = vperm.slane %v466_v44, 0 }
  0xa8   :  { %vm161_vm3 = vmor %vm159_vm2, %vm160_vm1 }
  0xa9   :  { %v155_v52 = vmul.f32 %v688_v50, %v154_v51 }
  0xab   :  { %v156_v53 = vmul.f32 0.5, %v155_v52 }
  0xad   :  { %v157_v54 = vsub.f32 1.5, %v156_v53 }
  0xaf   :  { %v158_v56 = vmul.f32 %v688_v50, %v157_v54 }
  0xb1   :  { %v162_v62 = vsel %vm161_vm3, %v688_v50, %v158_v56  ;;  %v469_v50 = vperm.slane %v466_v44, 1  ;;  %v494_v56 = vld.sshfl [vmem:[#allocation1 + $0x8] sm:$0xff pattern:$0x75316420] }
  0xb2   :  { %v163_v63 = vmul.f32 %v162_v62, %v150_v58  ;;  %v164_v1 = vmul.f32 %v162_v62, %v151_v59 }
  0xb4   :  { %v171_v5 = vmul.f32 %v167_v60, %v163_v63  ;;  %v172_v6 = vmul.f32 %v168_v61, %v164_v1 }
  0xb6   :  { %v179_v7 = vadd.f32 %v175_v0, %v171_v5  ;;  %v180_v8 = vadd.f32 %v176_v2, %v172_v6 }
  0xb8   :  { %v181_v9 = vpack.c.bf16 %v179_v7, %v179_v7  ;;  %v182_v10 = vpack.c.bf16 %v180_v8, %v180_v8 }
  0xba   :  { %389 = vmatmul.bf16.vlgmr.msra.gmra.mxu0 %v181_v9  ;;  %402 = vmatmul.bf16.vlgmr.msra.gmra.mxu1 %v182_v10 }
  0xbb   :  { %415 = vmatmul.bf16.vlgmr.msra.gmra.mxu2 %v181_v9  ;;  %428 = vmatmul.bf16.vlgmr.msra.gmra.mxu3 %v182_v10 }
 0x137   :  { %v390_v4 = vpop.f32.mrf.mxu0  ;;  %v403_v11 = vpop.f32.mrf.mxu1 }
 0x138   :  { %v391_v14 = vadd.f32 %v390_v4, %v217_v12 }
 0x13a   :  { %v404_v20 = vadd.f32 %v403_v11, %v391_v14 }
 0x13e   :  { %v416_v15 = vpop.f32.mrf.mxu2  ;;  %v429_v16 = vpop.f32.mrf.mxu3 }
 0x13f   :  { %v417_v17 = vadd.f32 %v416_v15, %v218_v13  ;;  %v392_v18 = vpop.f32.mrf.mxu0  ;;  %v405_v19 = vpop.f32.mrf.mxu1 }
 0x141   :  { %v430_v21 = vadd.f32 %v429_v16, %v417_v17 }
 0x143   :  { %v433_v22 = vadd.f32 %v430_v21, %v404_v20 }
 0x145   :  { %434 = vadd.xlane.f32.xlu1 %v433_v22 }
 0x146   :  { %v418_v23 = vpop.f32.mrf.mxu2  ;;  %v431_v24 = vpop.f32.mrf.mxu3 }
 0x1b8   :  { %v435_v28 = vpop.xlane.xlu1 %434 }
 0x1b9   :  { %v436_v29 = vmul.f32 0.00390625, %v435_v28 }
 0x1bb   :  { %v437_v30 = vsub.f32 %v404_v20, %v436_v29  ;;  %v438_v31 = vsub.f32 %v430_v21, %v436_v29 }
 0x1bd   :  { %v439_v32 = vmul.f32 %v437_v30, %v437_v30  ;;  %v440_v33 = vmul.f32 %v438_v31, %v438_v31 }
 0x1bf   :  { %v441_v34 = vadd.f32 %v440_v33, %v439_v32 }
 0x1c1   :  { %442 = vadd.xlane.f32.xlu1 %v441_v34 }
 0x234   :  { %v443_v35 = vpop.xlane.xlu1 %442 }
 0x235   :  { %v444_v36 = vmul.f32 0.00390625, %v443_v35 }
 0x237   :  { %v445_v37 = vadd.f32 1e-05, %v444_v36 }
 0x239   :  { %689 = vrsqrt.f32 %v445_v37  ;;  %vm452_vm5 = vweird.f32 %v445_v37 }
 0x23f   :  { %v690_v38 = vpop.eup %689 }
 0x240   :  { %v447_v39 = vmul.f32 %v690_v38, %v445_v37  ;;  %vm453_vm4 = vweird.f32 %v690_v38 }
 0x241   :  { %vm454_vm6 = vmor %vm452_vm5, %vm453_vm4 }
 0x242   :  { %v448_v40 = vmul.f32 %v690_v38, %v447_v39 }
 0x244   :  { %v449_v41 = vmul.f32 0.5, %v448_v40 }
 0x246   :  { %v450_v43 = vsub.f32 1.5, %v449_v41 }
 0x248   :  { %v451_v45 = vmul.f32 %v690_v38, %v450_v43 }
 0x24a   :  { %v455_v48 = vsel %vm454_vm6, %v690_v38, %v451_v45 }
 0x24b   :  { %v456_v51 = vmul.f32 %v455_v48, %v437_v30  ;;  %v457_v52 = vmul.f32 %v455_v48, %v438_v31 }
 0x24d   :  { %v464_v53 = vmul.f32 %v460_v46, %v456_v51  ;;  %v465_v54 = vmul.f32 %v461_v47, %v457_v52 }
 0x24f   :  { %v472_v57 = vadd.f32 %v468_v49, %v464_v53  ;;  %v473_v58 = vadd.f32 %v469_v50, %v465_v54 }
 0x251   :  { %v481_v59 = vadd.f32 %v477_v26, %v472_v57  ;;  %v482_v60 = vadd.f32 %v478_v27, %v473_v58  ;;  %v497_v61 = vadd.f32 %v493_v55, %v472_v57  ;;  %v498_v62 = vadd.f32 %v494_v56, %v473_v58 }
 0x253   :  { %v485_v63 = vrot.slane %v481_v59, 7  ;;  %v486_v0 = vrot.slane %v482_v60, 7  ;;  %v501_v1 = vrot.slane %v497_v61, 3  ;;  %v502_v2 = vrot.slane %v498_v62, 3 }
 0x255   :  { %489 = vst [vmem:[%s970_s9] sm:$0x1e] %v485_v63 }
 0x256   :  { %490 = vst [vmem:[%s970_s9 + $0x8] sm:$0x1e] %v486_v0 }
 0x257   :  { %645 = vst [vmem:[%s970_s9 + $0x10] sm:$0x1e] %v501_v1 }
 0x258   :  { %646 = vst [vmem:[%s970_s9 + $0x18] sm:$0x1e] %v502_v2 }
 0x259   :  { %512 = vsyncpa [#allocation3], 1 }
 0x25a   :  { %513 = vsyncpa [#allocation5], 1 }
 0x25b   :  { %514 = vsyncpa [#allocation8], 1 }
 0x25c   :  { %515 = vsyncpa [#allocation11], 1 }

// kernel: tpu_custom_call.1
= control target key start
LH: loop header
LB: loop body
LE: loop exit
PB: predicated region body
PF: predicated region fallthrough
CT: control target
= control target key end

     0   :  { %14 = vsyncpa [#allocation3], 0  ;;  %s961_s0 = inlined_call_operand.hbm [shape: f32[8,256], index: 0, kind: input, shape index: {}]   ;;  %s962_s1 = inlined_call_operand.hbm [shape: bf16[256,256], index: 1, kind: input, shape index: {}]   ;;  %s963_s2 = inlined_call_operand.hbm [shape: f32[1,256], index: 2, kind: input, shape index: {}]   ;;  %s964_s3 = inlined_call_operand.vmem [shape: f32[1,256], index: 3, kind: input, shape index: {}]   ;;  %s965_s4 = inlined_call_operand.hbm [shape: f32[1,256], index: 4, kind: input, shape index: {}]   ;;  %s966_s5 = inlined_call_operand.vmem [shape: f32[1,256], index: 5, kind: input, shape index: {}]   ;;  %s967_s6 = inlined_call_operand.hbm [shape: f32[1,256], index: 6, kind: input, shape index: {}]   ;;  %s968_s7 = inlined_call_operand.hbm [shape: f32[4,256], index: 7, kind: input, shape index: {}]   ;;  %s969_s8 = inlined_call_operand.vmem [shape: f32[1,256], index: 8, kind: input, shape index: {}]   ;;  %s970_s9 = inlined_call_operand.vmem [shape: f32[2,5,256], index: 9, kind: output, shape index: {}]  }
   0x1   :  { %15 = vsyncpa [#allocation5], 0 }
   0x2   :  { %16 = vsyncpa [#allocation8], 0  ;;  %s37_s11 = sshll.u32 %s962_s1, 4  ;;  %s38_s11 = int_to_ptr.hbm [resolvable:$true] %s37_s11 }
   0x3   :  { %17 = vsyncpa [#allocation11], 0  ;;  %s843_s12 = smov [#allocation4]   ;;  %s64_s16 = sshll.u32 %s965_s4, 4  ;;  %s65_s16 = int_to_ptr.hbm [resolvable:$true] %s64_s16 }
   0x4   :  { %s39_s13 = sshll.u32 %s843_s12, 4  ;;  %s844_s17 = smov 128   ;;  %s40_s13 = int_to_ptr.vmem [resolvable:$true] %s39_s13 }
   0x5   :  { %s845_s18 = smov 8   ;;  %s846_s19 = smov [#allocation7]  }
   0x6   :  { %45 = dma.hbm_to_vmem [thread:$0]  %s38_s11, 4096, %s40_s13, [#allocation5], %s844_s17, %s844_s17, %s845_s18  }
   0x7   :  { %s66_s20 = sshll.u32 %s846_s19, 4  ;;  %s27_s23 = sshll.u32 %s961_s0, 4  ;;  %s67_s20 = int_to_ptr.vmem [resolvable:$true] %s66_s20  ;;  %s28_s23 = int_to_ptr.hbm [resolvable:$true] %s27_s23 }
   0x8   :  { %69 = dma.hbm_to_vmem [thread:$0]  %s65_s16, 32, %s67_s20, [#allocation8]  }
   0x9   :  { %s51_s25 = sshll.u32 %s963_s2, 4  ;;  %s847_s26 = smov [#allocation2]   ;;  %s52_s25 = int_to_ptr.hbm [resolvable:$true] %s51_s25 }
   0xa   :  { %s29_s27 = sshll.u32 %s847_s26, 4  ;;  %s848_s4 = smov [#allocation6]   ;;  %s30_s27 = int_to_ptr.vmem [resolvable:$true] %s29_s27 }
   0xb   :  { %32 = dma.hbm_to_vmem [thread:$0]  %s28_s23, 256, %s30_s27, [#allocation3]  }
   0xc   :  { %s53_s28 = sshll.u32 %s848_s4, 4  ;;  %s77_s10 = sshll.u32 %s967_s6, 4  ;;  %s54_s28 = int_to_ptr.vmem [resolvable:$true] %s53_s28  ;;  %s78_s10 = int_to_ptr.hbm [resolvable:$true] %s77_s10 }
   0xd   :  { %56 = dma.hbm_to_vmem [thread:$0]  %s52_s25, 32, %s54_s28, [#allocation5]  }
   0xe   :  { %s88_s12 = sshll.u32 %s968_s7, 4  ;;  %s849_s13 = smov [#allocation9]   ;;  %s89_s12 = int_to_ptr.hbm [resolvable:$true] %s88_s12 }
   0xf   :  { %s79_s2 = sshll.u32 %s849_s13, 4  ;;  %s850_s14 = smov [#allocation10]   ;;  %s80_s2 = int_to_ptr.vmem [resolvable:$true] %s79_s2 }
  0x10   :  { %82 = dma.hbm_to_vmem [thread:$0]  %s78_s10, 32, %s80_s2, [#allocation8]  }
  0x11   :  { %s90_s15 = sshll.u32 %s850_s14, 4  ;;  %s91_s15 = int_to_ptr.vmem [resolvable:$true] %s90_s15 }
  0x12   :  { %93 = dma.hbm_to_vmem [thread:$0]  %s89_s12, 128, %s91_s15, [#allocation11]  }
  0x13   :  { %835 = dma.done.wait [#allocation3], 256  }
  0x14   :  { %836 = vsyncadd [#allocation3], 4294967040 }
  0x15   :  { %837 = dma.done.wait [#allocation5], 4128  }
  0x16   :  { %838 = vsyncadd [#allocation5], 4294963168 }
  0x17   :  { %839 = dma.done.wait [#allocation8], 64  }
  0x18   :  { %840 = vsyncadd [#allocation8], 4294967232 }
  0x19   :  { %841 = dma.done.wait [#allocation11], 128  }
  0x1a   :  { %842 = vsyncadd [#allocation11], 4294967168  ;;  %v126_v0 = vlaneseq  ;;  %v125_v1 = vld [vmem:[%s969_s8] sm:$0x3]  ;;  %v925_v3 = vld [vmem:[#allocation2] sm:$0xff] }
  0x1b   :  { %v132_v2 = vld [vmem:[%s969_s8] sm:$0x3]  ;;  %v930_v4 = vld [vmem:[#allocation2 + $0x8] sm:$0xff]  ;;  %v141_v6 = vmul.f32 %v925_v3, %v925_v3  ;;  %v575_v9 = vld [vmem:[#allocation4 + $0x70] sm:$0xf] }
  0x1c   :  { %vm128_vm0 = vcmp.lt.s32.totalorder %v126_v0, 256  ;;  %v138_v5 = vadd.f32 %v930_v4, %v925_v3  ;;  %v142_v7 = vmul.f32 %v930_v4, %v930_v4  ;;  %v662_v10 = vld [vmem:[#allocation4 + $0x74] sm:$0xf0]  ;;  %v639_v11 = vld [vmem:[#allocation4 + $0xf0] sm:$0xf] }
  0x1d   :  { %130 = vst.msk [vmem:[%s970_s9] ss:$8 sm:$0x3] %vm128_vm0, %v125_v1  ;;  %v576_v12 = vor.u32 %v662_v10, %v575_v9  ;;  %v678_v13 = vld [vmem:[#allocation4 + $0xf4] sm:$0xf0] }
  0x1e   :  { %516 = vst.msk [vmem:[%s970_s9 + $0x10] ss:$8 sm:$0x3] %vm128_vm0, %v132_v2  ;;  %139 = vadd.xlane.f32.xlu0 %v138_v5  ;;  %v143_v8 = vadd.f32 %v142_v7, %v141_v6  ;;  %v661_v14 = vld [vmem:[#allocation4 + $0x74] sm:$0xf]  ;;  %v640_v16 = vor.u32 %v678_v13, %v639_v11 }
  0x1f   :  { %v577_v15 = vld [vmem:[#allocation4 + $0x78] sm:$0xf0]  ;;  %v677_v18 = vld [vmem:[#allocation4 + $0xf4] sm:$0xf]  ;;  %381 = vmatpush.bf16.msra.mxu0 %v576_v12  ;;  %v567_v21 = vld [vmem:[#allocation4 + $0x60] sm:$0xf] }
  0x20   :  { %v580_v17 = vor.u32 %v661_v14, %v577_v15  ;;  %v641_v19 = vld [vmem:[#allocation4 + $0xf8] sm:$0xf0]  ;;  %394 = vmatpush.bf16.msra.mxu1 %v640_v16  ;;  %v660_v22 = vld [vmem:[#allocation4 + $0x64] sm:$0xf0]  ;;  %v631_v23 = vld [vmem:[#allocation4 + $0xe0] sm:$0xf] }
  0x21   :  { %v644_v20 = vor.u32 %v677_v18, %v641_v19  ;;  %v568_v24 = vor.u32 %v660_v22, %v567_v21  ;;  %v676_v25 = vld [vmem:[#allocation4 + $0xe4] sm:$0xf0]  ;;  %v659_v26 = vld [vmem:[#allocation4 + $0x64] sm:$0xf]  ;;  %v569_v27 = vld [vmem:[#allocation4 + $0x68] sm:$0xf0] }
  0x22   :  { %407 = vmatpush.bf16.msra.mxu2 %v580_v17  ;;  %v632_v28 = vor.u32 %v676_v25, %v631_v23  ;;  %v572_v29 = vor.u32 %v659_v26, %v569_v27  ;;  %v675_v30 = vld [vmem:[#allocation4 + $0xe4] sm:$0xf]  ;;  %v633_v31 = vld [vmem:[#allocation4 + $0xe8] sm:$0xf0]  ;;  %v559_v33 = vld [vmem:[#allocation4 + $0x50] sm:$0xf] }
  0x23   :  { %420 = vmatpush.bf16.msra.mxu3 %v644_v20  ;;  %382 = vmatpush.bf16.msra.mxu0 %v568_v24  ;;  %v636_v32 = vor.u32 %v675_v30, %v633_v31  ;;  %v658_v34 = vld [vmem:[#allocation4 + $0x54] sm:$0xf0]  ;;  %v623_v35 = vld [vmem:[#allocation4 + $0xd0] sm:$0xf]  ;;  %v657_v38 = vld [vmem:[#allocation4 + $0x54] sm:$0xf] }
  0x24   :  { %395 = vmatpush.bf16.msra.mxu1 %v632_v28  ;;  %v560_v36 = vor.u32 %v658_v34, %v559_v33  ;;  %v674_v37 = vld [vmem:[#allocation4 + $0xd4] sm:$0xf0]  ;;  %v561_v39 = vld [vmem:[#allocation4 + $0x58] sm:$0xf0]  ;;  %v673_v42 = vld [vmem:[#allocation4 + $0xd4] sm:$0xf] }
  0x25   :  { %v624_v40 = vor.u32 %v674_v37, %v623_v35  ;;  %v564_v41 = vor.u32 %v657_v38, %v561_v39  ;;  %v625_v43 = vld [vmem:[#allocation4 + $0xd8] sm:$0xf0]  ;;  %v551_v45 = vld [vmem:[#allocation4 + $0x40] sm:$0xf]  ;;  %v656_v46 = vld [vmem:[#allocation4 + $0x44] sm:$0xf0] }
  0x26   :  { %144 = vadd.xlane.f32.xlu0 %v143_v8  ;;  %408 = vmatpush.bf16.msra.mxu2 %v572_v29  ;;  %v628_v44 = vor.u32 %v673_v42, %v625_v43  ;;  %v615_v47 = vld [vmem:[#allocation4 + $0xc0] sm:$0xf]  ;;  %v552_v48 = vor.u32 %v656_v46, %v551_v45  ;;  %v672_v49 = vld [vmem:[#allocation4 + $0xc4] sm:$0xf0]  ;;  %v655_v50 = vld [vmem:[#allocation4 + $0x44] sm:$0xf] }
  0x27   :  { %421 = vmatpush.bf16.msra.mxu3 %v636_v32  ;;  %383 = vmatpush.bf16.msra.mxu0 %v560_v36  ;;  %v553_v51 = vld [vmem:[#allocation4 + $0x48] sm:$0xf0]  ;;  %v616_v52 = vor.u32 %v672_v49, %v615_v47  ;;  %v671_v54 = vld [vmem:[#allocation4 + $0xc4] sm:$0xf]  ;;  %v543_v57 = vld [vmem:[#allocation4 + $0x30] sm:$0xf] }
  0x28   :  { %396 = vmatpush.bf16.msra.mxu1 %v624_v40  ;;  %v556_v53 = vor.u32 %v655_v50, %v553_v51  ;;  %v617_v55 = vld [vmem:[#allocation4 + $0xc8] sm:$0xf0]  ;;  %v654_v58 = vld [vmem:[#allocation4 + $0x34] sm:$0xf0]  ;;  %v607_v59 = vld [vmem:[#allocation4 + $0xb0] sm:$0xf] }
  0x29   :  { %v620_v56 = vor.u32 %v671_v54, %v617_v55  ;;  %v544_v60 = vor.u32 %v654_v58, %v543_v57  ;;  %v670_v61 = vld [vmem:[#allocation4 + $0xb4] sm:$0xf0]  ;;  %v653_v62 = vld [vmem:[#allocation4 + $0x34] sm:$0xf]  ;;  %v545_v63 = vld [vmem:[#allocation4 + $0x38] sm:$0xf0] }
  0x2a   :  { %409 = vmatpush.bf16.msra.mxu2 %v564_v41  ;;  %v608_v0 = vor.u32 %v670_v61, %v607_v59  ;;  %v548_v1 = vor.u32 %v653_v62, %v545_v63  ;;  %v669_v2 = vld [vmem:[#allocation4 + $0xb4] sm:$0xf]  ;;  %v609_v5 = vld [vmem:[#allocation4 + $0xb8] sm:$0xf0]  ;;  %v535_v7 = vld [vmem:[#allocation4 + $0x20] sm:$0xf] }
  0x2b   :  { %422 = vmatpush.bf16.msra.mxu3 %v628_v44  ;;  %384 = vmatpush.bf16.msra.mxu0 %v552_v48  ;;  %v612_v6 = vor.u32 %v669_v2, %v609_v5  ;;  %v652_v8 = vld [vmem:[#allocation4 + $0x24] sm:$0xf0]  ;;  %v599_v9 = vld [vmem:[#allocation4 + $0xa0] sm:$0xf]  ;;  %v651_v12 = vld [vmem:[#allocation4 + $0x24] sm:$0xf] }
  0x2c   :  { %397 = vmatpush.bf16.msra.mxu1 %v616_v52  ;;  %v536_v10 = vor.u32 %v652_v8, %v535_v7  ;;  %v668_v11 = vld [vmem:[#allocation4 + $0xa4] sm:$0xf0]  ;;  %v537_v13 = vld [vmem:[#allocation4 + $0x28] sm:$0xf0]  ;;  %v667_v16 = vld [vmem:[#allocation4 + $0xa4] sm:$0xf] }
  0x2d   :  { %v600_v14 = vor.u32 %v668_v11, %v599_v9  ;;  %v540_v15 = vor.u32 %v651_v12, %v537_v13  ;;  %v601_v17 = vld [vmem:[#allocation4 + $0xa8] sm:$0xf0]  ;;  %v527_v18 = vld [vmem:[#allocation4 + $0x10] sm:$0xf]  ;;  %v650_v20 = vld [vmem:[#allocation4 + $0x14] sm:$0xf0] }
  0x2e   :  { %410 = vmatpush.bf16.msra.mxu2 %v556_v53  ;;  %v604_v19 = vor.u32 %v667_v16, %v601_v17  ;;  %v591_v21 = vld [vmem:[#allocation4 + $0x90] sm:$0xf]  ;;  %v666_v22 = vld [vmem:[#allocation4 + $0x94] sm:$0xf0]  ;;  %v528_v23 = vor.u32 %v650_v20, %v527_v18  ;;  %v649_v25 = vld [vmem:[#allocation4 + $0x14] sm:$0xf] }
  0x2f   :  { %423 = vmatpush.bf16.msra.mxu3 %v620_v56  ;;  %385 = vmatpush.bf16.msra.mxu0 %v544_v60  ;;  %v592_v24 = vor.u32 %v666_v22, %v591_v21  ;;  %v529_v26 = vld [vmem:[#allocation4 + $0x18] sm:$0xf0]  ;;  %v665_v27 = vld [vmem:[#allocation4 + $0x94] sm:$0xf]  ;;  %v519_v31 = vld [vmem:[#allocation4] sm:$0xf] }
  0x30   :  { %398 = vmatpush.bf16.msra.mxu1 %v608_v0  ;;  %v532_v29 = vor.u32 %v649_v25, %v529_v26  ;;  %v593_v30 = vld [vmem:[#allocation4 + $0x98] sm:$0xf0]  ;;  %v648_v32 = vld [vmem:[#allocation4 + $0x4] sm:$0xf0]  ;;  %v583_v34 = vld [vmem:[#allocation4 + $0x80] sm:$0xf] }
  0x31   :  { %v596_v33 = vor.u32 %v665_v27, %v593_v30  ;;  %v664_v35 = vld [vmem:[#allocation4 + $0x84] sm:$0xf0]  ;;  %v520_v36 = vor.u32 %v648_v32, %v519_v31  ;;  %v647_v37 = vld [vmem:[#allocation4 + $0x4] sm:$0xf]  ;;  %v521_v38 = vld [vmem:[#allocation4 + $0x8] sm:$0xf0] }
  0x32   :  { %411 = vmatpush.bf16.msra.mxu2 %v548_v1  ;;  %v663_v39 = vld [vmem:[#allocation4 + $0x84] sm:$0xf]  ;;  %v584_v40 = vor.u32 %v664_v35, %v583_v34  ;;  %v585_v41 = vld [vmem:[#allocation4 + $0x88] sm:$0xf0]  ;;  %v524_v42 = vor.u32 %v647_v37, %v521_v38  ;;  %v165_v55 = vld [vmem:[%s964_s3] sm:$0x3] }
  0x33   :  { %424 = vmatpush.bf16.msra.mxu3 %v612_v6  ;;  %386 = vmatpush.bf16.msra.mxu0 %v536_v10  ;;  %v588_v43 = vor.u32 %v663_v39, %v585_v41  ;;  %v173_v57 = vld [vmem:[#allocation7] sm:$0x3]  ;;  %v167_v60 = vperm.slane %v165_v55, 0  ;;  %v168_v61 = vperm.slane %v165_v55, 1  ;;  %v474_v25 = vld [vmem:[#allocation10] sm:$0xff] }
  0x34   :  { %399 = vmatpush.bf16.msra.mxu1 %v600_v14  ;;  %v175_v0 = vperm.slane %v173_v57, 0  ;;  %v176_v2 = vperm.slane %v173_v57, 1  ;;  %476 = vst [vmem:[#allocation1] ss:$2 sm:$0xff] %v474_v25 }
  0x36   :  { %412 = vmatpush.bf16.msra.mxu2 %v540_v15 }
  0x37   :  { %425 = vmatpush.bf16.msra.mxu3 %v604_v19  ;;  %387 = vmatpush.bf16.msra.mxu0 %v528_v23 }
  0x38   :  { %400 = vmatpush.bf16.msra.mxu1 %v592_v24 }
  0x3a   :  { %413 = vmatpush.bf16.msra.mxu2 %v532_v29 }
  0x3b   :  { %426 = vmatpush.bf16.msra.mxu3 %v596_v33  ;;  %388 = vmatpush.bf16.msra.mxu0 %v520_v36  ;;  %v477_v26 = vld.sshfl [vmem:[#allocation1] sm:$0xff pattern:$0x75316420]  ;;  %v478_v27 = vld.sshfl [vmem:[#allocation1 + $0x8] sm:$0xff pattern:$0x75316420] }
  0x3c   :  { %401 = vmatpush.bf16.msra.mxu1 %v584_v40  ;;  %492 = vst [vmem:[#allocation1 + $0x1] ss:$2 sm:$0xff] %v474_v25 }
  0x3e   :  { %414 = vmatpush.bf16.msra.mxu2 %v524_v42  ;;  %v458_v42 = vld [vmem:[%s966_s5] sm:$0x3] }
  0x3f   :  { %427 = vmatpush.bf16.msra.mxu3 %v588_v43 }
  0x43   :  { %v493_v55 = vld.sshfl [vmem:[#allocation1] sm:$0xff pattern:$0x75316420] }
  0x91   :  { %v140_v28 = vpop.xlane.xlu0 %139 }
  0x92   :  { %v146_v44 = vmul.f32 0.00390625, %v140_v28 }
  0x94   :  { %v148_v46 = vmul.f32 %v146_v44, %v146_v44  ;;  %v150_v58 = vsub.f32 %v925_v3, %v146_v44  ;;  %v151_v59 = vsub.f32 %v930_v4, %v146_v44  ;;  %v215_v3 = vld [vmem:[#allocation6] sm:$0x3]  ;;  %v466_v44 = vld [vmem:[#allocation9] sm:$0x3] }
  0x95   :  { %v217_v12 = vperm.slane %v215_v3, 0  ;;  %v218_v13 = vperm.slane %v215_v3, 1 }
  0x99   :  { %v145_v45 = vpop.xlane.xlu0 %144 }
  0x9a   :  { %v147_v47 = vmul.f32 0.00390625, %v145_v45 }
  0x9c   :  { %v149_v48 = vsub.f32 %v147_v47, %v148_v46  ;;  %v460_v46 = vperm.slane %v458_v42, 0  ;;  %v461_v47 = vperm.slane %v458_v42, 1 }
  0x9e   :  { %v152_v49 = vadd.f32 1e-05, %v149_v48 }
  0xa0   :  { %687 = vrsqrt.f32 %v152_v49  ;;  %vm159_vm2 = vweird.f32 %v152_v49 }
  0xa6   :  { %v688_v50 = vpop.eup %687 }
  0xa7   :  { %v154_v51 = vmul.f32 %v688_v50, %v152_v49  ;;  %vm160_vm1 = vweird.f32 %v688_v50  ;;  %v468_v49 = vperm.slane %v466_v44, 0 }
  0xa8   :  { %vm161_vm3 = vmor %vm159_vm2, %vm160_vm1 }
  0xa9   :  { %v155_v52 = vmul.f32 %v688_v50, %v154_v51 }
  0xab   :  { %v156_v53 = vmul.f32 0.5, %v155_v52 }
  0xad   :  { %v157_v54 = vsub.f32 1.5, %v156_v53 }
  0xaf   :  { %v158_v56 = vmul.f32 %v688_v50, %v157_v54 }
  0xb1   :  { %v162_v62 = vsel %vm161_vm3, %v688_v50, %v158_v56  ;;  %v469_v50 = vperm.slane %v466_v44, 1  ;;  %v494_v56 = vld.sshfl [vmem:[#allocation1 + $0x8] sm:$0xff pattern:$0x75316420] }
  0xb2   :  { %v163_v63 = vmul.f32 %v162_v62, %v150_v58  ;;  %v164_v1 = vmul.f32 %v162_v62, %v151_v59 }
  0xb4   :  { %v171_v5 = vmul.f32 %v167_v60, %v163_v63  ;;  %v172_v6 = vmul.f32 %v168_v61, %v164_v1 }
  0xb6   :  { %v179_v7 = vadd.f32 %v175_v0, %v171_v5  ;;  %v180_v8 = vadd.f32 %v176_v2, %v172_v6 }
  0xb8   :  { %v181_v9 = vpack.c.bf16 %v179_v7, %v179_v7  ;;  %v182_v10 = vpack.c.bf16 %v180_v8, %v180_v8 }
  0xba   :  { %389 = vmatmul.bf16.vlgmr.msra.gmra.mxu0 %v181_v9  ;;  %402 = vmatmul.bf16.vlgmr.msra.gmra.mxu1 %v182_v10 }
  0xbb   :  { %415 = vmatmul.bf16.vlgmr.msra.gmra.mxu2 %v181_v9  ;;  %428 = vmatmul.bf16.vlgmr.msra.gmra.mxu3 %v182_v10 }
 0x137   :  { %v390_v4 = vpop.f32.mrf.mxu0  ;;  %v403_v11 = vpop.f32.mrf.mxu1 }
 0x138   :  { %v391_v14 = vadd.f32 %v390_v4, %v217_v12 }
 0x13a   :  { %v404_v20 = vadd.f32 %v403_v11, %v391_v14 }
 0x13e   :  { %v416_v15 = vpop.f32.mrf.mxu2  ;;  %v429_v16 = vpop.f32.mrf.mxu3 }
 0x13f   :  { %v417_v17 = vadd.f32 %v416_v15, %v218_v13  ;;  %v392_v18 = vpop.f32.mrf.mxu0  ;;  %v405_v19 = vpop.f32.mrf.mxu1 }
 0x141   :  { %v430_v21 = vadd.f32 %v429_v16, %v417_v17 }
 0x143   :  { %v433_v22 = vadd.f32 %v430_v21, %v404_v20 }
 0x145   :  { %434 = vadd.xlane.f32.xlu1 %v433_v22 }
 0x146   :  { %v418_v23 = vpop.f32.mrf.mxu2  ;;  %v431_v24 = vpop.f32.mrf.mxu3 }
 0x1b8   :  { %v435_v28 = vpop.xlane.xlu1 %434 }
 0x1b9   :  { %v436_v29 = vmul.f32 0.00390625, %v435_v28 }
 0x1bb   :  { %v437_v30 = vsub.f32 %v404_v20, %v436_v29  ;;  %v438_v31 = vsub.f32 %v430_v21, %v436_v29 }
 0x1bd   :  { %v439_v32 = vmul.f32 %v437_v30, %v437_v30  ;;  %v440_v33 = vmul.f32 %v438_v31, %v438_v31 }
 0x1bf   :  { %v441_v34 = vadd.f32 %v440_v33, %v439_v32 }
 0x1c1   :  { %442 = vadd.xlane.f32.xlu1 %v441_v34 }
 0x234   :  { %v443_v35 = vpop.xlane.xlu1 %442 }
 0x235   :  { %v444_v36 = vmul.f32 0.00390625, %v443_v35 }
 0x237   :  { %v445_v37 = vadd.f32 1e-05, %v444_v36 }
 0x239   :  { %689 = vrsqrt.f32 %v445_v37  ;;  %vm452_vm5 = vweird.f32 %v445_v37 }
 0x23f   :  { %v690_v38 = vpop.eup %689 }
 0x240   :  { %v447_v39 = vmul.f32 %v690_v38, %v445_v37  ;;  %vm453_vm4 = vweird.f32 %v690_v38 }
 0x241   :  { %vm454_vm6 = vmor %vm452_vm5, %vm453_vm4 }
 0x242   :  { %v448_v40 = vmul.f32 %v690_v38, %v447_v39 }
 0x244   :  { %v449_v41 = vmul.f32 0.5, %v448_v40 }
 0x246   :  { %v450_v43 = vsub.f32 1.5, %v449_v41 }
 0x248   :  { %v451_v45 = vmul.f32 %v690_v38, %v450_v43 }
 0x24a   :  { %v455_v48 = vsel %vm454_vm6, %v690_v38, %v451_v45 }
 0x24b   :  { %v456_v51 = vmul.f32 %v455_v48, %v437_v30  ;;  %v457_v52 = vmul.f32 %v455_v48, %v438_v31 }
 0x24d   :  { %v464_v53 = vmul.f32 %v460_v46, %v456_v51  ;;  %v465_v54 = vmul.f32 %v461_v47, %v457_v52 }
 0x24f   :  { %v472_v57 = vadd.f32 %v468_v49, %v464_v53  ;;  %v473_v58 = vadd.f32 %v469_v50, %v465_v54 }
 0x251   :  { %v481_v59 = vadd.f32 %v477_v26, %v472_v57  ;;  %v482_v60 = vadd.f32 %v478_v27, %v473_v58  ;;  %v497_v61 = vadd.f32 %v493_v55, %v472_v57  ;;  %v498_v62 = vadd.f32 %v494_v56, %v473_v58 }
 0x253   :  { %v485_v63 = vrot.slane %v481_v59, 7  ;;  %v486_v0 = vrot.slane %v482_v60, 7  ;;  %v501_v1 = vrot.slane %v497_v61, 3  ;;  %v502_v2 = vrot.slane %v498_v62, 3 }
 0x255   :  { %489 = vst [vmem:[%s970_s9] sm:$0x1e] %v485_v63 }
 0x256   :  { %490 = vst [vmem:[%s970_s9 + $0x8] sm:$0x1e] %v486_v0 }
 0x257   :  { %645 = vst [vmem:[%s970_s9 + $0x10] sm:$0x1e] %v501_v1 }
 0x258   :  { %646 = vst [vmem:[%s970_s9 + $0x18] sm:$0x1e] %v502_v2 }
 0x259   :  { %512 = vsyncpa [#allocation3], 1 }
 0x25a   :  { %513 = vsyncpa [#allocation5], 1 }
 0x25b   :  { %514 = vsyncpa [#allocation8], 1 }
 0x25c   :  { %515 = vsyncpa [#allocation11], 1 }

</bundles_post_ra>
